<compile_context>
chip_gen: v5e
topology: v5e:2x2
jax: 0.10.0
libtpu: 0.0.40
codegen_flags: <defaults>
</compile_context>

<pallas_src>
import functools
import math

import jax
import jax.numpy as jnp
from jax.experimental import pallas as pl
from jax.experimental.pallas import tpu as pltpu


_VMEM_BUDGET = 24 * 1024 * 1024  # conservative: fits v7x's 32 MiB default scoped VMEM


def _block_rows(M, K, N, n_row_streams):
    """Pick a row tile that divides M, fits a double-buffered VMEM budget,
    and (when possible) yields >= 2 grid steps so megacore / pipelining help."""
    choices = [bm for bm in (512, 256, 128, 64, 32, 16, 8) if M % bm == 0] or [M]
    resident = 4 * K * N + 16 * N  # double-buffered bf16 weight + small f32 vectors
    fitting = [bm for bm in choices
               if resident + 8 * bm * (K + n_row_streams * N) <= _VMEM_BUDGET]
    if not fitting:
        return choices[-1]
    multi = [bm for bm in fitting if M // bm >= 2]
    return multi[0] if multi else fitting[0]


# ----------------------------- Pallas kernels ------------------------------

def _linear_kernel(x_ref, w_ref, b_ref, o_ref, *, activation):
    x = x_ref[...].astype(jnp.bfloat16)
    y = jnp.dot(x, w_ref[...], preferred_element_type=jnp.float32) + b_ref[...]
    if activation == "relu":
        y = jnp.maximum(y, 0.0)
    o_ref[...] = y.astype(o_ref.dtype)


def linear(x, w, b, activation=None):
    """y = x @ w + b (optionally ReLU). x:[M,K] f32, w:[K,N] bf16, b:[N] f32."""
    M, K = x.shape
    N = w.shape[1]
    bm = _block_rows(M, K, N, n_row_streams=1)
    kern = functools.partial(_linear_kernel, activation=activation)
    return pl.pallas_call(
        kern,
        out_shape=jax.ShapeDtypeStruct((M, N), jnp.float32),
        grid=(M // bm,),
        in_specs=[pl.BlockSpec((bm, K), lambda i: (i, 0)),
                  pl.BlockSpec((K, N), lambda i: (0, 0)),
                  pl.BlockSpec((1, N), lambda i: (0, 0))],
        out_specs=pl.BlockSpec((bm, N), lambda i: (i, 0)),
        compiler_params=pltpu.CompilerParams(dimension_semantics=("parallel",)),
    )(x, w, b.reshape(1, N))


def _linear_ln_kernel(x_ref, w_ref, b_ref, r_ref, g_ref, bb_ref, o_ref, *, eps):
    x = x_ref[...].astype(jnp.bfloat16)
    y = jnp.dot(x, w_ref[...], preferred_element_type=jnp.float32) + b_ref[...]
    h = y + r_ref[...]
    mean = jnp.mean(h, axis=-1, keepdims=True)
    var = jnp.mean((h - mean) * (h - mean), axis=-1, keepdims=True)
    o_ref[...] = ((h - mean) * jax.lax.rsqrt(var + eps) * g_ref[...]
                  + bb_ref[...]).astype(o_ref.dtype)


def linear_ln_residual(x, w, b, res, gamma, beta, eps=1e-5):
    """LayerNorm(res + (x @ w + b)) fused in one kernel.
    x:[M,K] f32, w:[K,N] bf16, b,gamma,beta:[N] f32, res:[M,N] f32."""
    M, K = x.shape
    N = w.shape[1]
    bm = _block_rows(M, K, N, n_row_streams=2)
    kern = functools.partial(_linear_ln_kernel, eps=eps)
    return pl.pallas_call(
        kern,
        out_shape=jax.ShapeDtypeStruct((M, N), jnp.float32),
        grid=(M // bm,),
        in_specs=[pl.BlockSpec((bm, K), lambda i: (i, 0)),
                  pl.BlockSpec((K, N), lambda i: (0, 0)),
                  pl.BlockSpec((1, N), lambda i: (0, 0)),
                  pl.BlockSpec((bm, N), lambda i: (i, 0)),
                  pl.BlockSpec((1, N), lambda i: (0, 0)),
                  pl.BlockSpec((1, N), lambda i: (0, 0))],
        out_specs=pl.BlockSpec((bm, N), lambda i: (i, 0)),
        compiler_params=pltpu.CompilerParams(dimension_semantics=("parallel",)),
    )(x, w, b.reshape(1, N), res, gamma.reshape(1, N), beta.reshape(1, N))


def _mha_kernel(q_ref, k_ref, v_ref, m_ref, ctx_ref, *attn_refs,
                inv_scale, causal, return_attn):
    q = q_ref[0].astype(jnp.bfloat16)      # (NH, Lq, Dh)
    k = k_ref[0].astype(jnp.bfloat16)      # (NH, Lk, Dh)
    v = v_ref[0].astype(jnp.bfloat16)      # (NH, Lk, Dh)
    pad = m_ref[0]                         # (1, Lk) int32, nonzero == keep
    energy = jnp.einsum("hqd,hkd->hqk", q, k,
                        preferred_element_type=jnp.float32) * inv_scale
    keep = pad != 0                        # (1, Lk)
    if causal:
        Lq, Lk = q.shape[1], k.shape[1]
        row = jax.lax.broadcasted_iota(jnp.int32, (Lq, Lk), 0)
        col = jax.lax.broadcasted_iota(jnp.int32, (Lq, Lk), 1)
        keep = keep & (col <= row)         # (Lq, Lk)
    energy = jnp.where(keep[None, :, :], energy, jnp.float32(-1e10))
    energy = energy - jnp.max(energy, axis=-1, keepdims=True)
    p = jnp.exp(energy)
    attn = p * pl.reciprocal(jnp.sum(p, axis=-1, keepdims=True), approx=True)
    ctx = jnp.einsum("hqk,hkd->hqd", attn.astype(jnp.bfloat16), v,
                     preferred_element_type=jnp.float32)
    ctx_ref[0] = ctx.astype(ctx_ref.dtype)
    if return_attn:
        attn_refs[0][0] = attn.astype(attn_refs[0].dtype)


def mha_attention(q, k, v, pad_mask, head_dim, causal, return_attn):
    """q,k,v:[B,NH,L,Dh] f32; pad_mask:[B,1,Lk] int32 -> (ctx, attn | None)."""
    B, NH, Lq, Dh = q.shape
    Lk = k.shape[2]
    kern = functools.partial(_mha_kernel, inv_scale=1.0 / math.sqrt(head_dim),
                             causal=causal, return_attn=return_attn)
    ctx_shape = jax.ShapeDtypeStruct((B, NH, Lq, Dh), jnp.float32)
    ctx_spec = pl.BlockSpec((1, NH, Lq, Dh), lambda b: (b, 0, 0, 0))
    if return_attn:
        out_shape = (ctx_shape, jax.ShapeDtypeStruct((B, NH, Lq, Lk), jnp.float32))
        out_specs = (ctx_spec, pl.BlockSpec((1, NH, Lq, Lk), lambda b: (b, 0, 0, 0)))
    else:
        out_shape = ctx_shape
        out_specs = ctx_spec
    res = pl.pallas_call(
        kern,
        out_shape=out_shape,
        grid=(B,),
        in_specs=[pl.BlockSpec((1, NH, Lq, Dh), lambda b: (b, 0, 0, 0)),
                  pl.BlockSpec((1, NH, Lk, Dh), lambda b: (b, 0, 0, 0)),
                  pl.BlockSpec((1, NH, Lk, Dh), lambda b: (b, 0, 0, 0)),
                  pl.BlockSpec((1, 1, Lk), lambda b: (b, 0, 0))],
        out_specs=out_specs,
        compiler_params=pltpu.CompilerParams(dimension_semantics=("parallel",)),
    )(q, k, v, pad_mask)
    if return_attn:
        return res[0], res[1]
    return res, None


# ------------------------- model forward (JAX glue) ------------------------

def mha_context(p, query, key, value, pad_mask, n_heads, causal, return_attn):
    """Multi-head attention up to (but not including) the output projection.
    Returns (ctx_flat:[B*Lq, H], attn:[B,NH,Lq,Lk] | None)."""
    B, Lq, H = query.shape
    Lk = key.shape[1]
    Dh = H // n_heads
    if query is key and key is value:
        # fused Q|K|V projection: single [H, 3H] matmul
        qkv = linear(query.reshape(-1, H), p["w_qkv"], p["b_qkv"])          # [B*Lq, 3H]
        qkv = qkv.reshape(B, Lq, 3, n_heads, Dh).transpose(2, 0, 3, 1, 4)   # [3,B,NH,Lq,Dh]
        q, k, v = qkv[0], qkv[1], qkv[2]
    else:
        wq, bq = p["w_qkv"][:, :H], p["b_qkv"][:H]
        wkv, bkv = p["w_qkv"][:, H:], p["b_qkv"][H:]
        q = linear(query.reshape(-1, H), wq, bq)
        q = q.reshape(B, Lq, n_heads, Dh).transpose(0, 2, 1, 3)             # [B,NH,Lq,Dh]
        kv = linear(key.reshape(-1, H), wkv, bkv)                           # [B*Lk, 2H]
        kv = kv.reshape(B, Lk, 2, n_heads, Dh).transpose(2, 0, 3, 1, 4)     # [2,B,NH,Lk,Dh]
        k, v = kv[0], kv[1]
    ctx, attn = mha_attention(q, k, v, pad_mask, Dh, causal, return_attn)
    ctx = ctx.transpose(0, 2, 1, 3).reshape(B * Lq, H)
    return ctx, attn


def encoder_layer(p, src, src_mask, n_heads):
    B, L, H = src.shape
    src_flat = src.reshape(-1, H)
    ctx, _ = mha_context(p["self_attn"], src, src, src, src_mask, n_heads,
                         causal=False, return_attn=False)
    # output projection + residual + LayerNorm fused
    src_flat = linear_ln_residual(ctx, p["self_attn"]["wo"], p["self_attn"]["bo"],
                                  src_flat, p["ln1_g"], p["ln1_b"])
    h = linear(src_flat, p["ff"]["w1"], p["ff"]["b1"], activation="relu")
    src_flat = linear_ln_residual(h, p["ff"]["w2"], p["ff"]["b2"],
                                  src_flat, p["ln2_g"], p["ln2_b"])
    return src_flat.reshape(B, L, H)


def decoder_layer(p, trg, enc_src, trg_mask, src_mask, n_heads, return_attn):
    B, Lt, H = trg.shape
    trg_flat = trg.reshape(-1, H)
    # masked self-attention (causal built in-kernel from the pad mask)
    ctx, _ = mha_context(p["self_attn"], trg, trg, trg, trg_mask, n_heads,
                         causal=True, return_attn=False)
    trg_flat = linear_ln_residual(ctx, p["self_attn"]["wo"], p["self_attn"]["bo"],
                                  trg_flat, p["ln1_g"], p["ln1_b"])
    # encoder-decoder cross attention (attn emitted only when requested)
    trg3 = trg_flat.reshape(B, Lt, H)
    ctx, attention = mha_context(p["enc_attn"], trg3, enc_src, enc_src, src_mask,
                                 n_heads, causal=False, return_attn=return_attn)
    trg_flat = linear_ln_residual(ctx, p["enc_attn"]["wo"], p["enc_attn"]["bo"],
                                  trg_flat, p["ln2_g"], p["ln2_b"])
    h = linear(trg_flat, p["ff"]["w1"], p["ff"]["b1"], activation="relu")
    trg_flat = linear_ln_residual(h, p["ff"]["w2"], p["ff"]["b2"],
                                  trg_flat, p["ln3_g"], p["ln3_b"])
    return trg_flat.reshape(B, Lt, H), attention


def encoder_forward(p, src, src_mask, n_heads):
    B, L = src.shape
    H = p["tok_emb"].shape[1]
    scale = jnp.sqrt(jnp.float32(H))
    # TODO(synk): embedding gather + scale + positional add left to XLA (no clean
    # Pallas gather at this size); it fuses into a few cheap HBM ops.
    x = p["tok_emb"][src] * scale + p["pos_emb"][:L][None, :, :]
    for lp in p["layers"]:
        x = encoder_layer(lp, x, src_mask, n_heads)
    return x


def decoder_forward(p, trg, enc_src, trg_mask, src_mask, n_heads):
    B, L = trg.shape
    H = p["tok_emb"].shape[1]
    scale = jnp.sqrt(jnp.float32(H))
    x = p["tok_emb"][trg] * scale + p["pos_emb"][:L][None, :, :]
    attention = None
    n_layers = len(p["layers"])
    for i, lp in enumerate(p["layers"]):
        last = (i == n_layers - 1)
        x, attn = decoder_layer(lp, x, enc_src, trg_mask, src_mask, n_heads,
                                return_attn=last)
        if last:
            attention = attn
    out = linear(x.reshape(-1, H), p["fc_out_w"], p["fc_out_b"]).reshape(B, L, -1)
    return out, attention


def seq2seq_forward(params, src, trg, *, src_pad_idx, trg_pad_idx, n_heads):
    # compact pad masks only (head broadcast + causal tril are built in-kernel)
    src_mask = (src != src_pad_idx).astype(jnp.int32)[:, None, :]   # [B,1,Ls]
    trg_mask = (trg != trg_pad_idx).astype(jnp.int32)[:, None, :]   # [B,1,Lt]
    enc_src = encoder_forward(params["encoder"], src, src_mask, n_heads)
    output, attention = decoder_forward(params["decoder"], trg, enc_src,
                                        trg_mask, src_mask, n_heads)
    return output, attention


# ------------------------------ param init ---------------------------------

def init_params(key, input_dim, output_dim, hid_dim, n_layers, n_heads, pf_dim,
                max_length=100):
    kit = iter(jax.random.split(key, 512))

    def nrm(shape, s=0.02):
        return jax.random.normal(next(kit), shape, jnp.float32) * s

    def lin(din, dout):
        return nrm((din, dout)), nrm((dout,))

    def mha_p(h):
        wq, bq = lin(h, h)
        wk, bk = lin(h, h)
        wv, bv = lin(h, h)
        wo, bo = lin(h, h)
        return {"w_qkv": jnp.concatenate([wq, wk, wv], axis=1).astype(jnp.bfloat16),
                "b_qkv": jnp.concatenate([bq, bk, bv], axis=0),
                "wo": wo.astype(jnp.bfloat16), "bo": bo}

    def ff_p(h, pf):
        w1, b1 = lin(h, pf)
        w2, b2 = lin(pf, h)
        return {"w1": w1.astype(jnp.bfloat16), "b1": b1,
                "w2": w2.astype(jnp.bfloat16), "b2": b2}

    ones = lambda: jnp.ones((hid_dim,), jnp.float32)
    zeros = lambda: jnp.zeros((hid_dim,), jnp.float32)

    def enc_layer_p():
        return {"self_attn": mha_p(hid_dim), "ff": ff_p(hid_dim, pf_dim),
                "ln1_g": ones(), "ln1_b": zeros(),
                "ln2_g": ones(), "ln2_b": zeros()}

    def dec_layer_p():
        return {"self_attn": mha_p(hid_dim), "enc_attn": mha_p(hid_dim),
                "ff": ff_p(hid_dim, pf_dim),
                "ln1_g": ones(), "ln1_b": zeros(),
                "ln2_g": ones(), "ln2_b": zeros(),
                "ln3_g": ones(), "ln3_b": zeros()}

    fc_w, fc_b = lin(hid_dim, output_dim)
    return {
        "encoder": {"tok_emb": nrm((input_dim, hid_dim), 1.0),
                    "pos_emb": nrm((max_length, hid_dim), 1.0),
                    "layers": [enc_layer_p() for _ in range(n_layers)]},
        "decoder": {"tok_emb": nrm((output_dim, hid_dim), 1.0),
                    "pos_emb": nrm((max_length, hid_dim), 1.0),
                    "layers": [dec_layer_p() for _ in range(n_layers)],
                    "fc_out_w": fc_w.astype(jnp.bfloat16), "fc_out_b": fc_b},
    }


# --------------------------------- main -------------------------------------

if __name__ == "__main__":
    SRC_PAD_IDX = 0
    TRG_PAD_IDX = 0
    INPUT_DIM, OUTPUT_DIM = 50, 50
    HID_DIM, N_LAYERS, N_HEADS, PF_DIM = 32, 2, 4, 64
    B, SRC_LEN, TRG_LEN = 2, 8, 8

    key = jax.random.PRNGKey(0)
    kp, ks, kt = jax.random.split(key, 3)
    params = init_params(kp, INPUT_DIM, OUTPUT_DIM, HID_DIM, N_LAYERS, N_HEADS, PF_DIM)

    src = jax.random.randint(ks, (B, SRC_LEN), 1, INPUT_DIM, dtype=jnp.int32)
    trg = jax.random.randint(kt, (B, TRG_LEN), 1, OUTPUT_DIM, dtype=jnp.int32)
    # introduce some padding tokens to exercise the masks
    src = src.at[:, -2:].set(SRC_PAD_IDX)
    trg = trg.at[:, -1:].set(TRG_PAD_IDX)

    fwd = jax.jit(functools.partial(seq2seq_forward,
                                    src_pad_idx=SRC_PAD_IDX,
                                    trg_pad_idx=TRG_PAD_IDX,
                                    n_heads=N_HEADS))
    output, attention = fwd(params, src, trg)
    jax.block_until_ready((output, attention))

    assert output.shape == (B, TRG_LEN, OUTPUT_DIM)
    assert attention.shape == (B, N_HEADS, TRG_LEN, SRC_LEN)
    assert bool(jnp.all(jnp.isfinite(output))) and bool(jnp.all(jnp.isfinite(attention)))
    print("KERNEL_OK")
</pallas_src>

<mosaic_0001>
module attributes {stable_mosaic.version = 11 : i64} {
  func.func @_linear_kernel(%arg0: i32, %arg1: memref<8x32xf32, #tpu.memory_space<vmem>>, %arg2: memref<32x96xbf16, #tpu.memory_space<vmem>>, %arg3: memref<1x96xf32, #tpu.memory_space<vmem>>, %arg4: memref<8x96xf32, #tpu.memory_space<vmem>>) attributes {dimension_semantics = [#tpu.dimension_semantics<parallel>], iteration_bounds = array<i64: 2>, scalar_prefetch = 0 : i64, scratch_operands = 0 : i64, tpu.core_type = #tpu.core_type<tc>, window_params = [{transform_indices = @transform_0, window_bounds = array<i64: 8, 32>}, {pipeline_mode = #tpu.pipeline_mode<synchronous>, transform_indices = @transform_1, window_bounds = array<i64: 32, 96>}, {pipeline_mode = #tpu.pipeline_mode<synchronous>, transform_indices = @transform_2, window_bounds = array<i64: 1, 96>}, {transform_indices = @transform_3, window_bounds = array<i64: 8, 96>}]} {
    %c0 = arith.constant 0 : index
    %c0_0 = arith.constant 0 : index
    %0 = vector.load %arg1[%c0, %c0_0] : memref<8x32xf32, #tpu.memory_space<vmem>>, vector<8x32xf32>
    %1 = arith.truncf %0 : vector<8x32xf32> to vector<8x32xbf16>
    %c0_1 = arith.constant 0 : index
    %c0_2 = arith.constant 0 : index
    %2 = vector.load %arg2[%c0_1, %c0_2] : memref<32x96xbf16, #tpu.memory_space<vmem>>, vector<32x96xbf16>
    %cst = arith.constant dense<0.000000e+00> : vector<8x96xf32>
    %3 = tpu.matmul %1, %2, %cst {dimension_numbers = #tpu.dot_dimension_numbers<[1], [0], [0], [1], [0, 0, 1, 1], [], []>} : vector<8x32xbf16>, vector<32x96xbf16>, vector<8x96xf32> -> vector<8x96xf32>
    %c0_3 = arith.constant 0 : index
    %c0_4 = arith.constant 0 : index
    %4 = vector.load %arg3[%c0_3, %c0_4] : memref<1x96xf32, #tpu.memory_space<vmem>>, vector<1x96xf32>
    %5 = vector.broadcast %4 : vector<1x96xf32> to vector<8x96xf32>
    %6 = arith.addf %3, %5 : vector<8x96xf32>
    %c0_5 = arith.constant 0 : index
    %c0_6 = arith.constant 0 : index
    %7 = vector.load %arg4[%c0_5, %c0_6] : memref<8x96xf32, #tpu.memory_space<vmem>>, vector<8x96xf32>
    tpu.vector_store %arg4[%c0_5, %c0_6], %6 {strides = array<i32>} : memref<8x96xf32, #tpu.memory_space<vmem>>, vector<8x96xf32>,
    return
  }
  func.func @transform_0(%arg0: i32) -> (i32, i32) {
    %c0_i32 = arith.constant 0 : i32
    %c0_i32_0 = arith.constant 0 : i32
    return %arg0, %c0_i32 : i32, i32
  }
  func.func @transform_1(%arg0: i32) -> (i32, i32) {
    %c0_i32 = arith.constant 0 : i32
    %c0_i32_0 = arith.constant 0 : i32
    %c0_i32_1 = arith.constant 0 : i32
    return %c0_i32, %c0_i32_0 : i32, i32
  }
  func.func @transform_2(%arg0: i32) -> (i32, i32) {
    %c0_i32 = arith.constant 0 : i32
    %c0_i32_0 = arith.constant 0 : i32
    %c0_i32_1 = arith.constant 0 : i32
    return %c0_i32, %c0_i32_0 : i32, i32
  }
  func.func @transform_3(%arg0: i32) -> (i32, i32) {
    %c0_i32 = arith.constant 0 : i32
    %c0_i32_0 = arith.constant 0 : i32
    return %arg0, %c0_i32 : i32, i32
  }
}

module attributes {stable_mosaic.version = 11 : i64} {
  func.func @_mha_kernel(%arg0: i32, %arg1: memref<1x4x8x8xf32, #tpu.memory_space<vmem>>, %arg2: memref<1x4x8x8xf32, #tpu.memory_space<vmem>>, %arg3: memref<1x4x8x8xf32, #tpu.memory_space<vmem>>, %arg4: memref<1x1x8xi32, #tpu.memory_space<vmem>>, %arg5: memref<1x4x8x8xf32, #tpu.memory_space<vmem>>) attributes {dimension_semantics = [#tpu.dimension_semantics<parallel>], iteration_bounds = array<i64: 2>, scalar_prefetch = 0 : i64, scratch_operands = 0 : i64, tpu.core_type = #tpu.core_type<tc>, window_params = [{transform_indices = @transform_0, window_bounds = array<i64: 1, 4, 8, 8>}, {transform_indices = @transform_1, window_bounds = array<i64: 1, 4, 8, 8>}, {transform_indices = @transform_2, window_bounds = array<i64: 1, 4, 8, 8>}, {transform_indices = @transform_3, window_bounds = array<i64: 1, 1, 8>}, {transform_indices = @transform_4, window_bounds = array<i64: 1, 4, 8, 8>}]} {
    %c0 = arith.constant 0 : index
    %c0_0 = arith.constant 0 : index
    %c0_1 = arith.constant 0 : index
    %c0_2 = arith.constant 0 : index
    %0 = vector.load %arg1[%c0, %c0_0, %c0_1, %c0_2] : memref<1x4x8x8xf32, #tpu.memory_space<vmem>>, vector<1x4x8x8xf32>
    %1 = vector.shape_cast %0 : vector<1x4x8x8xf32> to vector<4x8x8xf32>
    %2 = arith.truncf %1 : vector<4x8x8xf32> to vector<4x8x8xbf16>
    %c0_3 = arith.constant 0 : index
    %c0_4 = arith.constant 0 : index
    %c0_5 = arith.constant 0 : index
    %c0_6 = arith.constant 0 : index
    %3 = vector.load %arg2[%c0_3, %c0_4, %c0_5, %c0_6] : memref<1x4x8x8xf32, #tpu.memory_space<vmem>>, vector<1x4x8x8xf32>
    %4 = vector.shape_cast %3 : vector<1x4x8x8xf32> to vector<4x8x8xf32>
    %5 = arith.truncf %4 : vector<4x8x8xf32> to vector<4x8x8xbf16>
    %c0_7 = arith.constant 0 : index
    %c0_8 = arith.constant 0 : index
    %c0_9 = arith.constant 0 : index
    %c0_10 = arith.constant 0 : index
    %6 = vector.load %arg3[%c0_7, %c0_8, %c0_9, %c0_10] : memref<1x4x8x8xf32, #tpu.memory_space<vmem>>, vector<1x4x8x8xf32>
    %7 = vector.shape_cast %6 : vector<1x4x8x8xf32> to vector<4x8x8xf32>
    %8 = arith.truncf %7 : vector<4x8x8xf32> to vector<4x8x8xbf16>
    %c0_11 = arith.constant 0 : index
    %c0_12 = arith.constant 0 : index
    %c0_13 = arith.constant 0 : index
    %9 = vector.load %arg4[%c0_11, %c0_12, %c0_13] : memref<1x1x8xi32, #tpu.memory_space<vmem>>, vector<1x1x8xi32>
    %10 = vector.shape_cast %9 : vector<1x1x8xi32> to vector<1x8xi32>
    "tpu.trace_start"() <{level = 10 : i32, message = "hqd,hkd->hqk"}> : () -> ()
    %cst = arith.constant dense<0.000000e+00> : vector<4x8x8xf32>
    %11 = tpu.matmul %2, %5, %cst {dimension_numbers = #tpu.dot_dimension_numbers<[2], [2], [1], [1], [0, 0, 0, 1, 1, 1], [0], [0]>} : vector<4x8x8xbf16>, vector<4x8x8xbf16>, vector<4x8x8xf32> -> vector<4x8x8xf32>
    "tpu.trace_stop"() : () -> ()
    %cst_14 = arith.constant 0.353553385 : f32
    %12 = vector.broadcast %cst_14 : f32 to vector<4x8x8xf32>
    %13 = arith.mulf %11, %12 : vector<4x8x8xf32>
    %c0_i32 = arith.constant 0 : i32
    %14 = vector.broadcast %c0_i32 : i32 to vector<1x8xi32>
    %15 = arith.cmpi ne, %10, %14 : vector<1x8xi32>
    %16 = tpu.iota {dimensions = array<i32: 0>} : vector<8x8xi32>
    %17 = tpu.iota {dimensions = array<i32: 1>} : vector<8x8xi32>
    %18 = arith.cmpi sle, %17, %16 : vector<8x8xi32>
    %19 = vector.broadcast %15 : vector<1x8xi1> to vector<8x8xi1>
    %20 = arith.andi %19, %18 : vector<8x8xi1>
    %21 = vector.shape_cast %20 : vector<8x8xi1> to vector<1x8x8xi1>
    %cst_15 = arith.constant -1.000000e+10 : f32
    %22 = vector.shape_cast %21 : vector<1x8x8xi1> to vector<1x8x8xi1>
    %23 = vector.broadcast %22 : vector<1x8x8xi1> to vector<4x8x8xi1>
    %24 = vector.broadcast %cst_15 : f32 to vector<4x8x8xf32>
    %25 = arith.select %23, %13, %24 : vector<4x8x8xi1>, vector<4x8x8xf32>
    %cst_16 = arith.constant dense<0xFF800000> : vector<4x8xf32>
    %26 = vector.multi_reduction <maximumf>, %25, %cst_16 [2] : vector<4x8x8xf32> to vector<4x8xf32>
    %27 = vector.shape_cast %26 : vector<4x8xf32> to vector<4x8x1xf32>
    %28 = vector.broadcast %27 : vector<4x8x1xf32> to vector<4x8x8xf32>
    %29 = arith.subf %25, %28 : vector<4x8x8xf32>
    %30 = math.exp %29 : vector<4x8x8xf32>
    %cst_17 = arith.constant dense<0.000000e+00> : vector<4x8xf32>
    %31 = vector.multi_reduction <add>, %30, %cst_17 [2] : vector<4x8x8xf32> to vector<4x8xf32>
    %32 = vector.shape_cast %31 : vector<4x8xf32> to vector<4x8x1xf32>
    %33 = tpu.reciprocal %32 {approx = true} : vector<4x8x1xf32> -> vector<4x8x1xf32>
    %34 = vector.broadcast %33 : vector<4x8x1xf32> to vector<4x8x8xf32>
    %35 = arith.mulf %30, %34 : vector<4x8x8xf32>
    %36 = arith.truncf %35 : vector<4x8x8xf32> to vector<4x8x8xbf16>
    "tpu.trace_start"() <{level = 10 : i32, message = "hqk,hkd->hqd"}> : () -> ()
    %cst_18 = arith.constant dense<0.000000e+00> : vector<4x8x8xf32>
    %37 = tpu.matmul %36, %8, %cst_18 {dimension_numbers = #tpu.dot_dimension_numbers<[2], [1], [1], [2], [0, 0, 0, 1, 1, 2], [0], [0]>} : vector<4x8x8xbf16>, vector<4x8x8xbf16>, vector<4x8x8xf32> -> vector<4x8x8xf32>
    "tpu.trace_stop"() : () -> ()
    %c0_19 = arith.constant 0 : index
    %c0_20 = arith.constant 0 : index
    %c0_21 = arith.constant 0 : index
    %c0_22 = arith.constant 0 : index
    %38 = vector.load %arg5[%c0_19, %c0_20, %c0_21, %c0_22] : memref<1x4x8x8xf32, #tpu.memory_space<vmem>>, vector<1x4x8x8xf32>
    %39 = vector.shape_cast %38 : vector<1x4x8x8xf32> to vector<4x8x8xf32>
    %40 = vector.shape_cast %37 : vector<4x8x8xf32> to vector<1x4x8x8xf32>
    tpu.vector_store %arg5[%c0_19, %c0_20, %c0_21, %c0_22], %40 {strides = array<i32>} : memref<1x4x8x8xf32, #tpu.memory_space<vmem>>, vector<1x4x8x8xf32>,
    return
  }
  func.func @transform_0(%arg0: i32) -> (i32, i32, i32, i32) {
    %c0_i32 = arith.constant 0 : i32
    %c0_i32_0 = arith.constant 0 : i32
    %c0_i32_1 = arith.constant 0 : i32
    %c0_i32_2 = arith.constant 0 : i32
    return %arg0, %c0_i32, %c0_i32_0, %c0_i32_1 : i32, i32, i32, i32
  }
  func.func @transform_1(%arg0: i32) -> (i32, i32, i32, i32) {
    %c0_i32 = arith.constant 0 : i32
    %c0_i32_0 = arith.constant 0 : i32
    %c0_i32_1 = arith.constant 0 : i32
    %c0_i32_2 = arith.constant 0 : i32
    return %arg0, %c0_i32, %c0_i32_0, %c0_i32_1 : i32, i32, i32, i32
  }
  func.func @transform_2(%arg0: i32) -> (i32, i32, i32, i32) {
    %c0_i32 = arith.constant 0 : i32
    %c0_i32_0 = arith.constant 0 : i32
    %c0_i32_1 = arith.constant 0 : i32
    %c0_i32_2 = arith.constant 0 : i32
    return %arg0, %c0_i32, %c0_i32_0, %c0_i32_1 : i32, i32, i32, i32
  }
  func.func @transform_3(%arg0: i32) -> (i32, i32, i32) {
    %c0_i32 = arith.constant 0 : i32
    %c0_i32_0 = arith.constant 0 : i32
    %c0_i32_1 = arith.constant 0 : i32
    return %arg0, %c0_i32, %c0_i32_0 : i32, i32, i32
  }
  func.func @transform_4(%arg0: i32) -> (i32, i32, i32, i32) {
    %c0_i32 = arith.constant 0 : i32
    %c0_i32_0 = arith.constant 0 : i32
    %c0_i32_1 = arith.constant 0 : i32
    %c0_i32_2 = arith.constant 0 : i32
    return %arg0, %c0_i32, %c0_i32_0, %c0_i32_1 : i32, i32, i32, i32
  }
}

module attributes {stable_mosaic.version = 11 : i64} {
  func.func @_linear_ln_kernel(%arg0: i32, %arg1: memref<8x32xf32, #tpu.memory_space<vmem>>, %arg2: memref<32x32xbf16, #tpu.memory_space<vmem>>, %arg3: memref<1x32xf32, #tpu.memory_space<vmem>>, %arg4: memref<8x32xf32, #tpu.memory_space<vmem>>, %arg5: memref<1x32xf32, #tpu.memory_space<vmem>>, %arg6: memref<1x32xf32, #tpu.memory_space<vmem>>, %arg7: memref<8x32xf32, #tpu.memory_space<vmem>>) attributes {dimension_semantics = [#tpu.dimension_semantics<parallel>], iteration_bounds = array<i64: 2>, scalar_prefetch = 0 : i64, scratch_operands = 0 : i64, tpu.core_type = #tpu.core_type<tc>, window_params = [{transform_indices = @transform_0, window_bounds = array<i64: 8, 32>}, {pipeline_mode = #tpu.pipeline_mode<synchronous>, transform_indices = @transform_1, window_bounds = array<i64: 32, 32>}, {pipeline_mode = #tpu.pipeline_mode<synchronous>, transform_indices = @transform_2, window_bounds = array<i64: 1, 32>}, {transform_indices = @transform_3, window_bounds = array<i64: 8, 32>}, {pipeline_mode = #tpu.pipeline_mode<synchronous>, transform_indices = @transform_4, window_bounds = array<i64: 1, 32>}, {pipeline_mode = #tpu.pipeline_mode<synchronous>, transform_indices = @transform_5, window_bounds = array<i64: 1, 32>}, {transform_indices = @transform_6, window_bounds = array<i64: 8, 32>}]} {
    %c0 = arith.constant 0 : index
    %c0_0 = arith.constant 0 : index
    %0 = vector.load %arg1[%c0, %c0_0] : memref<8x32xf32, #tpu.memory_space<vmem>>, vector<8x32xf32>
    %1 = arith.truncf %0 : vector<8x32xf32> to vector<8x32xbf16>
    %c0_1 = arith.constant 0 : index
    %c0_2 = arith.constant 0 : index
    %2 = vector.load %arg2[%c0_1, %c0_2] : memref<32x32xbf16, #tpu.memory_space<vmem>>, vector<32x32xbf16>
    %cst = arith.constant dense<0.000000e+00> : vector<8x32xf32>
    %3 = tpu.matmul %1, %2, %cst {dimension_numbers = #tpu.dot_dimension_numbers<[1], [0], [0], [1], [0, 0, 1, 1], [], []>} : vector<8x32xbf16>, vector<32x32xbf16>, vector<8x32xf32> -> vector<8x32xf32>
    %c0_3 = arith.constant 0 : index
    %c0_4 = arith.constant 0 : index
    %4 = vector.load %arg3[%c0_3, %c0_4] : memref<1x32xf32, #tpu.memory_space<vmem>>, vector<1x32xf32>
    %5 = vector.broadcast %4 : vector<1x32xf32> to vector<8x32xf32>
    %6 = arith.addf %3, %5 : vector<8x32xf32>
    %c0_5 = arith.constant 0 : index
    %c0_6 = arith.constant 0 : index
    %7 = vector.load %arg4[%c0_5, %c0_6] : memref<8x32xf32, #tpu.memory_space<vmem>>, vector<8x32xf32>
    %8 = arith.addf %6, %7 : vector<8x32xf32>
    %cst_7 = arith.constant dense<0.000000e+00> : vector<8xf32>
    %9 = vector.multi_reduction <add>, %8, %cst_7 [1] : vector<8x32xf32> to vector<8xf32>
    %10 = vector.shape_cast %9 : vector<8xf32> to vector<8x1xf32>
    %cst_8 = arith.constant 3.200000e+01 : f32
    %11 = vector.broadcast %cst_8 : f32 to vector<8x1xf32>
    %12 = arith.divf %10, %11 : vector<8x1xf32>
    %13 = vector.broadcast %12 : vector<8x1xf32> to vector<8x32xf32>
    %14 = arith.subf %8, %13 : vector<8x32xf32>
    %15 = vector.broadcast %12 : vector<8x1xf32> to vector<8x32xf32>
    %16 = arith.subf %8, %15 : vector<8x32xf32>
    %17 = arith.mulf %14, %16 : vector<8x32xf32>
    %cst_9 = arith.constant dense<0.000000e+00> : vector<8xf32>
    %18 = vector.multi_reduction <add>, %17, %cst_9 [1] : vector<8x32xf32> to vector<8xf32>
    %19 = vector.shape_cast %18 : vector<8xf32> to vector<8x1xf32>
    %cst_10 = arith.constant 3.200000e+01 : f32
    %20 = vector.broadcast %cst_10 : f32 to vector<8x1xf32>
    %21 = arith.divf %19, %20 : vector<8x1xf32>
    %22 = vector.broadcast %12 : vector<8x1xf32> to vector<8x32xf32>
    %23 = arith.subf %8, %22 : vector<8x32xf32>
    %cst_11 = arith.constant 9.99999974E-6 : f32
    %24 = vector.broadcast %cst_11 : f32 to vector<8x1xf32>
    %25 = arith.addf %21, %24 : vector<8x1xf32>
    %26 = math.rsqrt %25 : vector<8x1xf32>
    %27 = vector.broadcast %26 : vector<8x1xf32> to vector<8x32xf32>
    %28 = arith.mulf %23, %27 : vector<8x32xf32>
    %c0_12 = arith.constant 0 : index
    %c0_13 = arith.constant 0 : index
    %29 = vector.load %arg5[%c0_12, %c0_13] : memref<1x32xf32, #tpu.memory_space<vmem>>, vector<1x32xf32>
    %30 = vector.broadcast %29 : vector<1x32xf32> to vector<8x32xf32>
    %31 = arith.mulf %28, %30 : vector<8x32xf32>
    %c0_14 = arith.constant 0 : index
    %c0_15 = arith.constant 0 : index
    %32 = vector.load %arg6[%c0_14, %c0_15] : memref<1x32xf32, #tpu.memory_space<vmem>>, vector<1x32xf32>
    %33 = vector.broadcast %32 : vector<1x32xf32> to vector<8x32xf32>
    %34 = arith.addf %31, %33 : vector<8x32xf32>
    %c0_16 = arith.constant 0 : index
    %c0_17 = arith.constant 0 : index
    %35 = vector.load %arg7[%c0_16, %c0_17] : memref<8x32xf32, #tpu.memory_space<vmem>>, vector<8x32xf32>
    tpu.vector_store %arg7[%c0_16, %c0_17], %34 {strides = array<i32>} : memref<8x32xf32, #tpu.memory_space<vmem>>, vector<8x32xf32>,
    return
  }
  func.func @transform_0(%arg0: i32) -> (i32, i32) {
    %c0_i32 = arith.constant 0 : i32
    %c0_i32_0 = arith.constant 0 : i32
    return %arg0, %c0_i32 : i32, i32
  }
  func.func @transform_1(%arg0: i32) -> (i32, i32) {
    %c0_i32 = arith.constant 0 : i32
    %c0_i32_0 = arith.constant 0 : i32
    %c0_i32_1 = arith.constant 0 : i32
    return %c0_i32, %c0_i32_0 : i32, i32
  }
  func.func @transform_2(%arg0: i32) -> (i32, i32) {
    %c0_i32 = arith.constant 0 : i32
    %c0_i32_0 = arith.constant 0 : i32
    %c0_i32_1 = arith.constant 0 : i32
    return %c0_i32, %c0_i32_0 : i32, i32
  }
  func.func @transform_3(%arg0: i32) -> (i32, i32) {
    %c0_i32 = arith.constant 0 : i32
    %c0_i32_0 = arith.constant 0 : i32
    return %arg0, %c0_i32 : i32, i32
  }
  func.func @transform_4(%arg0: i32) -> (i32, i32) {
    %c0_i32 = arith.constant 0 : i32
    %c0_i32_0 = arith.constant 0 : i32
    %c0_i32_1 = arith.constant 0 : i32
    return %c0_i32, %c0_i32_0 : i32, i32
  }
  func.func @transform_5(%arg0: i32) -> (i32, i32) {
    %c0_i32 = arith.constant 0 : i32
    %c0_i32_0 = arith.constant 0 : i32
    %c0_i32_1 = arith.constant 0 : i32
    return %c0_i32, %c0_i32_0 : i32, i32
  }
  func.func @transform_6(%arg0: i32) -> (i32, i32) {
    %c0_i32 = arith.constant 0 : i32
    %c0_i32_0 = arith.constant 0 : i32
    return %arg0, %c0_i32 : i32, i32
  }
}

module attributes {stable_mosaic.version = 11 : i64} {
  func.func @_linear_kernel(%arg0: i32, %arg1: memref<8x32xf32, #tpu.memory_space<vmem>>, %arg2: memref<32x32xbf16, #tpu.memory_space<vmem>>, %arg3: memref<1x32xf32, #tpu.memory_space<vmem>>, %arg4: memref<8x32xf32, #tpu.memory_space<vmem>>) attributes {dimension_semantics = [#tpu.dimension_semantics<parallel>], iteration_bounds = array<i64: 2>, scalar_prefetch = 0 : i64, scratch_operands = 0 : i64, tpu.core_type = #tpu.core_type<tc>, window_params = [{transform_indices = @transform_0, window_bounds = array<i64: 8, 32>}, {pipeline_mode = #tpu.pipeline_mode<synchronous>, transform_indices = @transform_1, window_bounds = array<i64: 32, 32>}, {pipeline_mode = #tpu.pipeline_mode<synchronous>, transform_indices = @transform_2, window_bounds = array<i64: 1, 32>}, {transform_indices = @transform_3, window_bounds = array<i64: 8, 32>}]} {
    %c0 = arith.constant 0 : index
    %c0_0 = arith.constant 0 : index
    %0 = vector.load %arg1[%c0, %c0_0] : memref<8x32xf32, #tpu.memory_space<vmem>>, vector<8x32xf32>
    %1 = arith.truncf %0 : vector<8x32xf32> to vector<8x32xbf16>
    %c0_1 = arith.constant 0 : index
    %c0_2 = arith.constant 0 : index
    %2 = vector.load %arg2[%c0_1, %c0_2] : memref<32x32xbf16, #tpu.memory_space<vmem>>, vector<32x32xbf16>
    %cst = arith.constant dense<0.000000e+00> : vector<8x32xf32>
    %3 = tpu.matmul %1, %2, %cst {dimension_numbers = #tpu.dot_dimension_numbers<[1], [0], [0], [1], [0, 0, 1, 1], [], []>} : vector<8x32xbf16>, vector<32x32xbf16>, vector<8x32xf32> -> vector<8x32xf32>
    %c0_3 = arith.constant 0 : index
    %c0_4 = arith.constant 0 : index
    %4 = vector.load %arg3[%c0_3, %c0_4] : memref<1x32xf32, #tpu.memory_space<vmem>>, vector<1x32xf32>
    %5 = vector.broadcast %4 : vector<1x32xf32> to vector<8x32xf32>
    %6 = arith.addf %3, %5 : vector<8x32xf32>
    %c0_5 = arith.constant 0 : index
    %c0_6 = arith.constant 0 : index
    %7 = vector.load %arg4[%c0_5, %c0_6] : memref<8x32xf32, #tpu.memory_space<vmem>>, vector<8x32xf32>
    tpu.vector_store %arg4[%c0_5, %c0_6], %6 {strides = array<i32>} : memref<8x32xf32, #tpu.memory_space<vmem>>, vector<8x32xf32>,
    return
  }
  func.func @transform_0(%arg0: i32) -> (i32, i32) {
    %c0_i32 = arith.constant 0 : i32
    %c0_i32_0 = arith.constant 0 : i32
    return %arg0, %c0_i32 : i32, i32
  }
  func.func @transform_1(%arg0: i32) -> (i32, i32) {
    %c0_i32 = arith.constant 0 : i32
    %c0_i32_0 = arith.constant 0 : i32
    %c0_i32_1 = arith.constant 0 : i32
    return %c0_i32, %c0_i32_0 : i32, i32
  }
  func.func @transform_2(%arg0: i32) -> (i32, i32) {
    %c0_i32 = arith.constant 0 : i32
    %c0_i32_0 = arith.constant 0 : i32
    %c0_i32_1 = arith.constant 0 : i32
    return %c0_i32, %c0_i32_0 : i32, i32
  }
  func.func @transform_3(%arg0: i32) -> (i32, i32) {
    %c0_i32 = arith.constant 0 : i32
    %c0_i32_0 = arith.constant 0 : i32
    return %arg0, %c0_i32 : i32, i32
  }
}

module attributes {stable_mosaic.version = 11 : i64} {
  func.func @_mha_kernel(%arg0: i32, %arg1: memref<1x4x8x8xf32, #tpu.memory_space<vmem>>, %arg2: memref<1x4x8x8xf32, #tpu.memory_space<vmem>>, %arg3: memref<1x4x8x8xf32, #tpu.memory_space<vmem>>, %arg4: memref<1x1x8xi32, #tpu.memory_space<vmem>>, %arg5: memref<1x4x8x8xf32, #tpu.memory_space<vmem>>) attributes {dimension_semantics = [#tpu.dimension_semantics<parallel>], iteration_bounds = array<i64: 2>, scalar_prefetch = 0 : i64, scratch_operands = 0 : i64, tpu.core_type = #tpu.core_type<tc>, window_params = [{transform_indices = @transform_0, window_bounds = array<i64: 1, 4, 8, 8>}, {transform_indices = @transform_1, window_bounds = array<i64: 1, 4, 8, 8>}, {transform_indices = @transform_2, window_bounds = array<i64: 1, 4, 8, 8>}, {transform_indices = @transform_3, window_bounds = array<i64: 1, 1, 8>}, {transform_indices = @transform_4, window_bounds = array<i64: 1, 4, 8, 8>}]} {
    %c0 = arith.constant 0 : index
    %c0_0 = arith.constant 0 : index
    %c0_1 = arith.constant 0 : index
    %c0_2 = arith.constant 0 : index
    %0 = vector.load %arg1[%c0, %c0_0, %c0_1, %c0_2] : memref<1x4x8x8xf32, #tpu.memory_space<vmem>>, vector<1x4x8x8xf32>
    %1 = vector.shape_cast %0 : vector<1x4x8x8xf32> to vector<4x8x8xf32>
    %2 = arith.truncf %1 : vector<4x8x8xf32> to vector<4x8x8xbf16>
    %c0_3 = arith.constant 0 : index
    %c0_4 = arith.constant 0 : index
    %c0_5 = arith.constant 0 : index
    %c0_6 = arith.constant 0 : index
    %3 = vector.load %arg2[%c0_3, %c0_4, %c0_5, %c0_6] : memref<1x4x8x8xf32, #tpu.memory_space<vmem>>, vector<1x4x8x8xf32>
    %4 = vector.shape_cast %3 : vector<1x4x8x8xf32> to vector<4x8x8xf32>
    %5 = arith.truncf %4 : vector<4x8x8xf32> to vector<4x8x8xbf16>
    %c0_7 = arith.constant 0 : index
    %c0_8 = arith.constant 0 : index
    %c0_9 = arith.constant 0 : index
    %c0_10 = arith.constant 0 : index
    %6 = vector.load %arg3[%c0_7, %c0_8, %c0_9, %c0_10] : memref<1x4x8x8xf32, #tpu.memory_space<vmem>>, vector<1x4x8x8xf32>
    %7 = vector.shape_cast %6 : vector<1x4x8x8xf32> to vector<4x8x8xf32>
    %8 = arith.truncf %7 : vector<4x8x8xf32> to vector<4x8x8xbf16>
    %c0_11 = arith.constant 0 : index
    %c0_12 = arith.constant 0 : index
    %c0_13 = arith.constant 0 : index
    %9 = vector.load %arg4[%c0_11, %c0_12, %c0_13] : memref<1x1x8xi32, #tpu.memory_space<vmem>>, vector<1x1x8xi32>
    %10 = vector.shape_cast %9 : vector<1x1x8xi32> to vector<1x8xi32>
    "tpu.trace_start"() <{level = 10 : i32, message = "hqd,hkd->hqk"}> : () -> ()
    %cst = arith.constant dense<0.000000e+00> : vector<4x8x8xf32>
    %11 = tpu.matmul %2, %5, %cst {dimension_numbers = #tpu.dot_dimension_numbers<[2], [2], [1], [1], [0, 0, 0, 1, 1, 1], [0], [0]>} : vector<4x8x8xbf16>, vector<4x8x8xbf16>, vector<4x8x8xf32> -> vector<4x8x8xf32>
    "tpu.trace_stop"() : () -> ()
    %cst_14 = arith.constant 0.353553385 : f32
    %12 = vector.broadcast %cst_14 : f32 to vector<4x8x8xf32>
    %13 = arith.mulf %11, %12 : vector<4x8x8xf32>
    %c0_i32 = arith.constant 0 : i32
    %14 = vector.broadcast %c0_i32 : i32 to vector<1x8xi32>
    %15 = arith.cmpi ne, %10, %14 : vector<1x8xi32>
    %16 = vector.shape_cast %15 : vector<1x8xi1> to vector<1x1x8xi1>
    %cst_15 = arith.constant -1.000000e+10 : f32
    %17 = vector.shape_cast %16 : vector<1x1x8xi1> to vector<1x1x8xi1>
    %18 = vector.broadcast %17 : vector<1x1x8xi1> to vector<4x8x8xi1>
    %19 = vector.broadcast %cst_15 : f32 to vector<4x8x8xf32>
    %20 = arith.select %18, %13, %19 : vector<4x8x8xi1>, vector<4x8x8xf32>
    %cst_16 = arith.constant dense<0xFF800000> : vector<4x8xf32>
    %21 = vector.multi_reduction <maximumf>, %20, %cst_16 [2] : vector<4x8x8xf32> to vector<4x8xf32>
    %22 = vector.shape_cast %21 : vector<4x8xf32> to vector<4x8x1xf32>
    %23 = vector.broadcast %22 : vector<4x8x1xf32> to vector<4x8x8xf32>
    %24 = arith.subf %20, %23 : vector<4x8x8xf32>
    %25 = math.exp %24 : vector<4x8x8xf32>
    %cst_17 = arith.constant dense<0.000000e+00> : vector<4x8xf32>
    %26 = vector.multi_reduction <add>, %25, %cst_17 [2] : vector<4x8x8xf32> to vector<4x8xf32>
    %27 = vector.shape_cast %26 : vector<4x8xf32> to vector<4x8x1xf32>
    %28 = tpu.reciprocal %27 {approx = true} : vector<4x8x1xf32> -> vector<4x8x1xf32>
    %29 = vector.broadcast %28 : vector<4x8x1xf32> to vector<4x8x8xf32>
    %30 = arith.mulf %25, %29 : vector<4x8x8xf32>
    %31 = arith.truncf %30 : vector<4x8x8xf32> to vector<4x8x8xbf16>
    "tpu.trace_start"() <{level = 10 : i32, message = "hqk,hkd->hqd"}> : () -> ()
    %cst_18 = arith.constant dense<0.000000e+00> : vector<4x8x8xf32>
    %32 = tpu.matmul %31, %8, %cst_18 {dimension_numbers = #tpu.dot_dimension_numbers<[2], [1], [1], [2], [0, 0, 0, 1, 1, 2], [0], [0]>} : vector<4x8x8xbf16>, vector<4x8x8xbf16>, vector<4x8x8xf32> -> vector<4x8x8xf32>
    "tpu.trace_stop"() : () -> ()
    %c0_19 = arith.constant 0 : index
    %c0_20 = arith.constant 0 : index
    %c0_21 = arith.constant 0 : index
    %c0_22 = arith.constant 0 : index
    %33 = vector.load %arg5[%c0_19, %c0_20, %c0_21, %c0_22] : memref<1x4x8x8xf32, #tpu.memory_space<vmem>>, vector<1x4x8x8xf32>
    %34 = vector.shape_cast %33 : vector<1x4x8x8xf32> to vector<4x8x8xf32>
    %35 = vector.shape_cast %32 : vector<4x8x8xf32> to vector<1x4x8x8xf32>
    tpu.vector_store %arg5[%c0_19, %c0_20, %c0_21, %c0_22], %35 {strides = array<i32>} : memref<1x4x8x8xf32, #tpu.memory_space<vmem>>, vector<1x4x8x8xf32>,
    return
  }
  func.func @transform_0(%arg0: i32) -> (i32, i32, i32, i32) {
    %c0_i32 = arith.constant 0 : i32
    %c0_i32_0 = arith.constant 0 : i32
    %c0_i32_1 = arith.constant 0 : i32
    %c0_i32_2 = arith.constant 0 : i32
    return %arg0, %c0_i32, %c0_i32_0, %c0_i32_1 : i32, i32, i32, i32
  }
  func.func @transform_1(%arg0: i32) -> (i32, i32, i32, i32) {
    %c0_i32 = arith.constant 0 : i32
    %c0_i32_0 = arith.constant 0 : i32
    %c0_i32_1 = arith.constant 0 : i32
    %c0_i32_2 = arith.constant 0 : i32
    return %arg0, %c0_i32, %c0_i32_0, %c0_i32_1 : i32, i32, i32, i32
  }
  func.func @transform_2(%arg0: i32) -> (i32, i32, i32, i32) {
    %c0_i32 = arith.constant 0 : i32
    %c0_i32_0 = arith.constant 0 : i32
    %c0_i32_1 = arith.constant 0 : i32
    %c0_i32_2 = arith.constant 0 : i32
    return %arg0, %c0_i32, %c0_i32_0, %c0_i32_1 : i32, i32, i32, i32
  }
  func.func @transform_3(%arg0: i32) -> (i32, i32, i32) {
    %c0_i32 = arith.constant 0 : i32
    %c0_i32_0 = arith.constant 0 : i32
    %c0_i32_1 = arith.constant 0 : i32
    return %arg0, %c0_i32, %c0_i32_0 : i32, i32, i32
  }
  func.func @transform_4(%arg0: i32) -> (i32, i32, i32, i32) {
    %c0_i32 = arith.constant 0 : i32
    %c0_i32_0 = arith.constant 0 : i32
    %c0_i32_1 = arith.constant 0 : i32
    %c0_i32_2 = arith.constant 0 : i32
    return %arg0, %c0_i32, %c0_i32_0, %c0_i32_1 : i32, i32, i32, i32
  }
}

module attributes {stable_mosaic.version = 11 : i64} {
  func.func @_linear_kernel(%arg0: i32, %arg1: memref<8x32xf32, #tpu.memory_space<vmem>>, %arg2: memref<32x64xbf16, #tpu.memory_space<vmem>>, %arg3: memref<1x64xf32, #tpu.memory_space<vmem>>, %arg4: memref<8x64xf32, #tpu.memory_space<vmem>>) attributes {dimension_semantics = [#tpu.dimension_semantics<parallel>], iteration_bounds = array<i64: 2>, scalar_prefetch = 0 : i64, scratch_operands = 0 : i64, tpu.core_type = #tpu.core_type<tc>, window_params = [{transform_indices = @transform_0, window_bounds = array<i64: 8, 32>}, {pipeline_mode = #tpu.pipeline_mode<synchronous>, transform_indices = @transform_1, window_bounds = array<i64: 32, 64>}, {pipeline_mode = #tpu.pipeline_mode<synchronous>, transform_indices = @transform_2, window_bounds = array<i64: 1, 64>}, {transform_indices = @transform_3, window_bounds = array<i64: 8, 64>}]} {
    %c0 = arith.constant 0 : index
    %c0_0 = arith.constant 0 : index
    %0 = vector.load %arg1[%c0, %c0_0] : memref<8x32xf32, #tpu.memory_space<vmem>>, vector<8x32xf32>
    %1 = arith.truncf %0 : vector<8x32xf32> to vector<8x32xbf16>
    %c0_1 = arith.constant 0 : index
    %c0_2 = arith.constant 0 : index
    %2 = vector.load %arg2[%c0_1, %c0_2] : memref<32x64xbf16, #tpu.memory_space<vmem>>, vector<32x64xbf16>
    %cst = arith.constant dense<0.000000e+00> : vector<8x64xf32>
    %3 = tpu.matmul %1, %2, %cst {dimension_numbers = #tpu.dot_dimension_numbers<[1], [0], [0], [1], [0, 0, 1, 1], [], []>} : vector<8x32xbf16>, vector<32x64xbf16>, vector<8x64xf32> -> vector<8x64xf32>
    %c0_3 = arith.constant 0 : index
    %c0_4 = arith.constant 0 : index
    %4 = vector.load %arg3[%c0_3, %c0_4] : memref<1x64xf32, #tpu.memory_space<vmem>>, vector<1x64xf32>
    %5 = vector.broadcast %4 : vector<1x64xf32> to vector<8x64xf32>
    %6 = arith.addf %3, %5 : vector<8x64xf32>
    %cst_5 = arith.constant 0.000000e+00 : f32
    %7 = vector.broadcast %cst_5 : f32 to vector<8x64xf32>
    %8 = arith.maximumf %6, %7 : vector<8x64xf32>
    %c0_6 = arith.constant 0 : index
    %c0_7 = arith.constant 0 : index
    %9 = vector.load %arg4[%c0_6, %c0_7] : memref<8x64xf32, #tpu.memory_space<vmem>>, vector<8x64xf32>
    tpu.vector_store %arg4[%c0_6, %c0_7], %8 {strides = array<i32>} : memref<8x64xf32, #tpu.memory_space<vmem>>, vector<8x64xf32>,
    return
  }
  func.func @transform_0(%arg0: i32) -> (i32, i32) {
    %c0_i32 = arith.constant 0 : i32
    %c0_i32_0 = arith.constant 0 : i32
    return %arg0, %c0_i32 : i32, i32
  }
  func.func @transform_1(%arg0: i32) -> (i32, i32) {
    %c0_i32 = arith.constant 0 : i32
    %c0_i32_0 = arith.constant 0 : i32
    %c0_i32_1 = arith.constant 0 : i32
    return %c0_i32, %c0_i32_0 : i32, i32
  }
  func.func @transform_2(%arg0: i32) -> (i32, i32) {
    %c0_i32 = arith.constant 0 : i32
    %c0_i32_0 = arith.constant 0 : i32
    %c0_i32_1 = arith.constant 0 : i32
    return %c0_i32, %c0_i32_0 : i32, i32
  }
  func.func @transform_3(%arg0: i32) -> (i32, i32) {
    %c0_i32 = arith.constant 0 : i32
    %c0_i32_0 = arith.constant 0 : i32
    return %arg0, %c0_i32 : i32, i32
  }
}

module attributes {stable_mosaic.version = 11 : i64} {
  func.func @_linear_ln_kernel(%arg0: i32, %arg1: memref<8x64xf32, #tpu.memory_space<vmem>>, %arg2: memref<64x32xbf16, #tpu.memory_space<vmem>>, %arg3: memref<1x32xf32, #tpu.memory_space<vmem>>, %arg4: memref<8x32xf32, #tpu.memory_space<vmem>>, %arg5: memref<1x32xf32, #tpu.memory_space<vmem>>, %arg6: memref<1x32xf32, #tpu.memory_space<vmem>>, %arg7: memref<8x32xf32, #tpu.memory_space<vmem>>) attributes {dimension_semantics = [#tpu.dimension_semantics<parallel>], iteration_bounds = array<i64: 2>, scalar_prefetch = 0 : i64, scratch_operands = 0 : i64, tpu.core_type = #tpu.core_type<tc>, window_params = [{transform_indices = @transform_0, window_bounds = array<i64: 8, 64>}, {pipeline_mode = #tpu.pipeline_mode<synchronous>, transform_indices = @transform_1, window_bounds = array<i64: 64, 32>}, {pipeline_mode = #tpu.pipeline_mode<synchronous>, transform_indices = @transform_2, window_bounds = array<i64: 1, 32>}, {transform_indices = @transform_3, window_bounds = array<i64: 8, 32>}, {pipeline_mode = #tpu.pipeline_mode<synchronous>, transform_indices = @transform_4, window_bounds = array<i64: 1, 32>}, {pipeline_mode = #tpu.pipeline_mode<synchronous>, transform_indices = @transform_5, window_bounds = array<i64: 1, 32>}, {transform_indices = @transform_6, window_bounds = array<i64: 8, 32>}]} {
    %c0 = arith.constant 0 : index
    %c0_0 = arith.constant 0 : index
    %0 = vector.load %arg1[%c0, %c0_0] : memref<8x64xf32, #tpu.memory_space<vmem>>, vector<8x64xf32>
    %1 = arith.truncf %0 : vector<8x64xf32> to vector<8x64xbf16>
    %c0_1 = arith.constant 0 : index
    %c0_2 = arith.constant 0 : index
    %2 = vector.load %arg2[%c0_1, %c0_2] : memref<64x32xbf16, #tpu.memory_space<vmem>>, vector<64x32xbf16>
    %cst = arith.constant dense<0.000000e+00> : vector<8x32xf32>
    %3 = tpu.matmul %1, %2, %cst {dimension_numbers = #tpu.dot_dimension_numbers<[1], [0], [0], [1], [0, 0, 1, 1], [], []>} : vector<8x64xbf16>, vector<64x32xbf16>, vector<8x32xf32> -> vector<8x32xf32>
    %c0_3 = arith.constant 0 : index
    %c0_4 = arith.constant 0 : index
    %4 = vector.load %arg3[%c0_3, %c0_4] : memref<1x32xf32, #tpu.memory_space<vmem>>, vector<1x32xf32>
    %5 = vector.broadcast %4 : vector<1x32xf32> to vector<8x32xf32>
    %6 = arith.addf %3, %5 : vector<8x32xf32>
    %c0_5 = arith.constant 0 : index
    %c0_6 = arith.constant 0 : index
    %7 = vector.load %arg4[%c0_5, %c0_6] : memref<8x32xf32, #tpu.memory_space<vmem>>, vector<8x32xf32>
    %8 = arith.addf %6, %7 : vector<8x32xf32>
    %cst_7 = arith.constant dense<0.000000e+00> : vector<8xf32>
    %9 = vector.multi_reduction <add>, %8, %cst_7 [1] : vector<8x32xf32> to vector<8xf32>
    %10 = vector.shape_cast %9 : vector<8xf32> to vector<8x1xf32>
    %cst_8 = arith.constant 3.200000e+01 : f32
    %11 = vector.broadcast %cst_8 : f32 to vector<8x1xf32>
    %12 = arith.divf %10, %11 : vector<8x1xf32>
    %13 = vector.broadcast %12 : vector<8x1xf32> to vector<8x32xf32>
    %14 = arith.subf %8, %13 : vector<8x32xf32>
    %15 = vector.broadcast %12 : vector<8x1xf32> to vector<8x32xf32>
    %16 = arith.subf %8, %15 : vector<8x32xf32>
    %17 = arith.mulf %14, %16 : vector<8x32xf32>
    %cst_9 = arith.constant dense<0.000000e+00> : vector<8xf32>
    %18 = vector.multi_reduction <add>, %17, %cst_9 [1] : vector<8x32xf32> to vector<8xf32>
    %19 = vector.shape_cast %18 : vector<8xf32> to vector<8x1xf32>
    %cst_10 = arith.constant 3.200000e+01 : f32
    %20 = vector.broadcast %cst_10 : f32 to vector<8x1xf32>
    %21 = arith.divf %19, %20 : vector<8x1xf32>
    %22 = vector.broadcast %12 : vector<8x1xf32> to vector<8x32xf32>
    %23 = arith.subf %8, %22 : vector<8x32xf32>
    %cst_11 = arith.constant 9.99999974E-6 : f32
    %24 = vector.broadcast %cst_11 : f32 to vector<8x1xf32>
    %25 = arith.addf %21, %24 : vector<8x1xf32>
    %26 = math.rsqrt %25 : vector<8x1xf32>
    %27 = vector.broadcast %26 : vector<8x1xf32> to vector<8x32xf32>
    %28 = arith.mulf %23, %27 : vector<8x32xf32>
    %c0_12 = arith.constant 0 : index
    %c0_13 = arith.constant 0 : index
    %29 = vector.load %arg5[%c0_12, %c0_13] : memref<1x32xf32, #tpu.memory_space<vmem>>, vector<1x32xf32>
    %30 = vector.broadcast %29 : vector<1x32xf32> to vector<8x32xf32>
    %31 = arith.mulf %28, %30 : vector<8x32xf32>
    %c0_14 = arith.constant 0 : index
    %c0_15 = arith.constant 0 : index
    %32 = vector.load %arg6[%c0_14, %c0_15] : memref<1x32xf32, #tpu.memory_space<vmem>>, vector<1x32xf32>
    %33 = vector.broadcast %32 : vector<1x32xf32> to vector<8x32xf32>
    %34 = arith.addf %31, %33 : vector<8x32xf32>
    %c0_16 = arith.constant 0 : index
    %c0_17 = arith.constant 0 : index
    %35 = vector.load %arg7[%c0_16, %c0_17] : memref<8x32xf32, #tpu.memory_space<vmem>>, vector<8x32xf32>
    tpu.vector_store %arg7[%c0_16, %c0_17], %34 {strides = array<i32>} : memref<8x32xf32, #tpu.memory_space<vmem>>, vector<8x32xf32>,
    return
  }
  func.func @transform_0(%arg0: i32) -> (i32, i32) {
    %c0_i32 = arith.constant 0 : i32
    %c0_i32_0 = arith.constant 0 : i32
    return %arg0, %c0_i32 : i32, i32
  }
  func.func @transform_1(%arg0: i32) -> (i32, i32) {
    %c0_i32 = arith.constant 0 : i32
    %c0_i32_0 = arith.constant 0 : i32
    %c0_i32_1 = arith.constant 0 : i32
    return %c0_i32, %c0_i32_0 : i32, i32
  }
  func.func @transform_2(%arg0: i32) -> (i32, i32) {
    %c0_i32 = arith.constant 0 : i32
    %c0_i32_0 = arith.constant 0 : i32
    %c0_i32_1 = arith.constant 0 : i32
    return %c0_i32, %c0_i32_0 : i32, i32
  }
  func.func @transform_3(%arg0: i32) -> (i32, i32) {
    %c0_i32 = arith.constant 0 : i32
    %c0_i32_0 = arith.constant 0 : i32
    return %arg0, %c0_i32 : i32, i32
  }
  func.func @transform_4(%arg0: i32) -> (i32, i32) {
    %c0_i32 = arith.constant 0 : i32
    %c0_i32_0 = arith.constant 0 : i32
    %c0_i32_1 = arith.constant 0 : i32
    return %c0_i32, %c0_i32_0 : i32, i32
  }
  func.func @transform_5(%arg0: i32) -> (i32, i32) {
    %c0_i32 = arith.constant 0 : i32
    %c0_i32_0 = arith.constant 0 : i32
    %c0_i32_1 = arith.constant 0 : i32
    return %c0_i32, %c0_i32_0 : i32, i32
  }
  func.func @transform_6(%arg0: i32) -> (i32, i32) {
    %c0_i32 = arith.constant 0 : i32
    %c0_i32_0 = arith.constant 0 : i32
    return %arg0, %c0_i32 : i32, i32
  }
}

module attributes {stable_mosaic.version = 11 : i64} {
  func.func @_linear_kernel(%arg0: i32, %arg1: memref<8x32xf32, #tpu.memory_space<vmem>>, %arg2: memref<32x64xbf16, #tpu.memory_space<vmem>>, %arg3: memref<1x64xf32, #tpu.memory_space<vmem>>, %arg4: memref<8x64xf32, #tpu.memory_space<vmem>>) attributes {dimension_semantics = [#tpu.dimension_semantics<parallel>], iteration_bounds = array<i64: 2>, scalar_prefetch = 0 : i64, scratch_operands = 0 : i64, tpu.core_type = #tpu.core_type<tc>, window_params = [{transform_indices = @transform_0, window_bounds = array<i64: 8, 32>}, {pipeline_mode = #tpu.pipeline_mode<synchronous>, transform_indices = @transform_1, window_bounds = array<i64: 32, 64>}, {pipeline_mode = #tpu.pipeline_mode<synchronous>, transform_indices = @transform_2, window_bounds = array<i64: 1, 64>}, {transform_indices = @transform_3, window_bounds = array<i64: 8, 64>}]} {
    %c0 = arith.constant 0 : index
    %c0_0 = arith.constant 0 : index
    %0 = vector.load %arg1[%c0, %c0_0] : memref<8x32xf32, #tpu.memory_space<vmem>>, vector<8x32xf32>
    %1 = arith.truncf %0 : vector<8x32xf32> to vector<8x32xbf16>
    %c0_1 = arith.constant 0 : index
    %c0_2 = arith.constant 0 : index
    %2 = vector.load %arg2[%c0_1, %c0_2] : memref<32x64xbf16, #tpu.memory_space<vmem>>, vector<32x64xbf16>
    %cst = arith.constant dense<0.000000e+00> : vector<8x64xf32>
    %3 = tpu.matmul %1, %2, %cst {dimension_numbers = #tpu.dot_dimension_numbers<[1], [0], [0], [1], [0, 0, 1, 1], [], []>} : vector<8x32xbf16>, vector<32x64xbf16>, vector<8x64xf32> -> vector<8x64xf32>
    %c0_3 = arith.constant 0 : index
    %c0_4 = arith.constant 0 : index
    %4 = vector.load %arg3[%c0_3, %c0_4] : memref<1x64xf32, #tpu.memory_space<vmem>>, vector<1x64xf32>
    %5 = vector.broadcast %4 : vector<1x64xf32> to vector<8x64xf32>
    %6 = arith.addf %3, %5 : vector<8x64xf32>
    %c0_5 = arith.constant 0 : index
    %c0_6 = arith.constant 0 : index
    %7 = vector.load %arg4[%c0_5, %c0_6] : memref<8x64xf32, #tpu.memory_space<vmem>>, vector<8x64xf32>
    tpu.vector_store %arg4[%c0_5, %c0_6], %6 {strides = array<i32>} : memref<8x64xf32, #tpu.memory_space<vmem>>, vector<8x64xf32>,
    return
  }
  func.func @transform_0(%arg0: i32) -> (i32, i32) {
    %c0_i32 = arith.constant 0 : i32
    %c0_i32_0 = arith.constant 0 : i32
    return %arg0, %c0_i32 : i32, i32
  }
  func.func @transform_1(%arg0: i32) -> (i32, i32) {
    %c0_i32 = arith.constant 0 : i32
    %c0_i32_0 = arith.constant 0 : i32
    %c0_i32_1 = arith.constant 0 : i32
    return %c0_i32, %c0_i32_0 : i32, i32
  }
  func.func @transform_2(%arg0: i32) -> (i32, i32) {
    %c0_i32 = arith.constant 0 : i32
    %c0_i32_0 = arith.constant 0 : i32
    %c0_i32_1 = arith.constant 0 : i32
    return %c0_i32, %c0_i32_0 : i32, i32
  }
  func.func @transform_3(%arg0: i32) -> (i32, i32) {
    %c0_i32 = arith.constant 0 : i32
    %c0_i32_0 = arith.constant 0 : i32
    return %arg0, %c0_i32 : i32, i32
  }
}

module attributes {stable_mosaic.version = 11 : i64} {
  func.func @_mha_kernel(%arg0: i32, %arg1: memref<1x4x8x8xf32, #tpu.memory_space<vmem>>, %arg2: memref<1x4x8x8xf32, #tpu.memory_space<vmem>>, %arg3: memref<1x4x8x8xf32, #tpu.memory_space<vmem>>, %arg4: memref<1x1x8xi32, #tpu.memory_space<vmem>>, %arg5: memref<1x4x8x8xf32, #tpu.memory_space<vmem>>, %arg6: memref<1x4x8x8xf32, #tpu.memory_space<vmem>>) attributes {dimension_semantics = [#tpu.dimension_semantics<parallel>], iteration_bounds = array<i64: 2>, scalar_prefetch = 0 : i64, scratch_operands = 0 : i64, tpu.core_type = #tpu.core_type<tc>, window_params = [{transform_indices = @transform_0, window_bounds = array<i64: 1, 4, 8, 8>}, {transform_indices = @transform_1, window_bounds = array<i64: 1, 4, 8, 8>}, {transform_indices = @transform_2, window_bounds = array<i64: 1, 4, 8, 8>}, {transform_indices = @transform_3, window_bounds = array<i64: 1, 1, 8>}, {transform_indices = @transform_4, window_bounds = array<i64: 1, 4, 8, 8>}, {transform_indices = @transform_5, window_bounds = array<i64: 1, 4, 8, 8>}]} {
    %c0 = arith.constant 0 : index
    %c0_0 = arith.constant 0 : index
    %c0_1 = arith.constant 0 : index
    %c0_2 = arith.constant 0 : index
    %0 = vector.load %arg1[%c0, %c0_0, %c0_1, %c0_2] : memref<1x4x8x8xf32, #tpu.memory_space<vmem>>, vector<1x4x8x8xf32>
    %1 = vector.shape_cast %0 : vector<1x4x8x8xf32> to vector<4x8x8xf32>
    %2 = arith.truncf %1 : vector<4x8x8xf32> to vector<4x8x8xbf16>
    %c0_3 = arith.constant 0 : index
    %c0_4 = arith.constant 0 : index
    %c0_5 = arith.constant 0 : index
    %c0_6 = arith.constant 0 : index
    %3 = vector.load %arg2[%c0_3, %c0_4, %c0_5, %c0_6] : memref<1x4x8x8xf32, #tpu.memory_space<vmem>>, vector<1x4x8x8xf32>
    %4 = vector.shape_cast %3 : vector<1x4x8x8xf32> to vector<4x8x8xf32>
    %5 = arith.truncf %4 : vector<4x8x8xf32> to vector<4x8x8xbf16>
    %c0_7 = arith.constant 0 : index
    %c0_8 = arith.constant 0 : index
    %c0_9 = arith.constant 0 : index
    %c0_10 = arith.constant 0 : index
    %6 = vector.load %arg3[%c0_7, %c0_8, %c0_9, %c0_10] : memref<1x4x8x8xf32, #tpu.memory_space<vmem>>, vector<1x4x8x8xf32>
    %7 = vector.shape_cast %6 : vector<1x4x8x8xf32> to vector<4x8x8xf32>
    %8 = arith.truncf %7 : vector<4x8x8xf32> to vector<4x8x8xbf16>
    %c0_11 = arith.constant 0 : index
    %c0_12 = arith.constant 0 : index
    %c0_13 = arith.constant 0 : index
    %9 = vector.load %arg4[%c0_11, %c0_12, %c0_13] : memref<1x1x8xi32, #tpu.memory_space<vmem>>, vector<1x1x8xi32>
    %10 = vector.shape_cast %9 : vector<1x1x8xi32> to vector<1x8xi32>
    "tpu.trace_start"() <{level = 10 : i32, message = "hqd,hkd->hqk"}> : () -> ()
    %cst = arith.constant dense<0.000000e+00> : vector<4x8x8xf32>
    %11 = tpu.matmul %2, %5, %cst {dimension_numbers = #tpu.dot_dimension_numbers<[2], [2], [1], [1], [0, 0, 0, 1, 1, 1], [0], [0]>} : vector<4x8x8xbf16>, vector<4x8x8xbf16>, vector<4x8x8xf32> -> vector<4x8x8xf32>
    "tpu.trace_stop"() : () -> ()
    %cst_14 = arith.constant 0.353553385 : f32
    %12 = vector.broadcast %cst_14 : f32 to vector<4x8x8xf32>
    %13 = arith.mulf %11, %12 : vector<4x8x8xf32>
    %c0_i32 = arith.constant 0 : i32
    %14 = vector.broadcast %c0_i32 : i32 to vector<1x8xi32>
    %15 = arith.cmpi ne, %10, %14 : vector<1x8xi32>
    %16 = vector.shape_cast %15 : vector<1x8xi1> to vector<1x1x8xi1>
    %cst_15 = arith.constant -1.000000e+10 : f32
    %17 = vector.shape_cast %16 : vector<1x1x8xi1> to vector<1x1x8xi1>
    %18 = vector.broadcast %17 : vector<1x1x8xi1> to vector<4x8x8xi1>
    %19 = vector.broadcast %cst_15 : f32 to vector<4x8x8xf32>
    %20 = arith.select %18, %13, %19 : vector<4x8x8xi1>, vector<4x8x8xf32>
    %cst_16 = arith.constant dense<0xFF800000> : vector<4x8xf32>
    %21 = vector.multi_reduction <maximumf>, %20, %cst_16 [2] : vector<4x8x8xf32> to vector<4x8xf32>
    %22 = vector.shape_cast %21 : vector<4x8xf32> to vector<4x8x1xf32>
    %23 = vector.broadcast %22 : vector<4x8x1xf32> to vector<4x8x8xf32>
    %24 = arith.subf %20, %23 : vector<4x8x8xf32>
    %25 = math.exp %24 : vector<4x8x8xf32>
    %cst_17 = arith.constant dense<0.000000e+00> : vector<4x8xf32>
    %26 = vector.multi_reduction <add>, %25, %cst_17 [2] : vector<4x8x8xf32> to vector<4x8xf32>
    %27 = vector.shape_cast %26 : vector<4x8xf32> to vector<4x8x1xf32>
    %28 = tpu.reciprocal %27 {approx = true} : vector<4x8x1xf32> -> vector<4x8x1xf32>
    %29 = vector.broadcast %28 : vector<4x8x1xf32> to vector<4x8x8xf32>
    %30 = arith.mulf %25, %29 : vector<4x8x8xf32>
    %31 = arith.truncf %30 : vector<4x8x8xf32> to vector<4x8x8xbf16>
    "tpu.trace_start"() <{level = 10 : i32, message = "hqk,hkd->hqd"}> : () -> ()
    %cst_18 = arith.constant dense<0.000000e+00> : vector<4x8x8xf32>
    %32 = tpu.matmul %31, %8, %cst_18 {dimension_numbers = #tpu.dot_dimension_numbers<[2], [1], [1], [2], [0, 0, 0, 1, 1, 2], [0], [0]>} : vector<4x8x8xbf16>, vector<4x8x8xbf16>, vector<4x8x8xf32> -> vector<4x8x8xf32>
    "tpu.trace_stop"() : () -> ()
    %c0_19 = arith.constant 0 : index
    %c0_20 = arith.constant 0 : index
    %c0_21 = arith.constant 0 : index
    %c0_22 = arith.constant 0 : index
    %33 = vector.load %arg5[%c0_19, %c0_20, %c0_21, %c0_22] : memref<1x4x8x8xf32, #tpu.memory_space<vmem>>, vector<1x4x8x8xf32>
    %34 = vector.shape_cast %33 : vector<1x4x8x8xf32> to vector<4x8x8xf32>
    %35 = vector.shape_cast %32 : vector<4x8x8xf32> to vector<1x4x8x8xf32>
    tpu.vector_store %arg5[%c0_19, %c0_20, %c0_21, %c0_22], %35 {strides = array<i32>} : memref<1x4x8x8xf32, #tpu.memory_space<vmem>>, vector<1x4x8x8xf32>,
    %c0_23 = arith.constant 0 : index
    %c0_24 = arith.constant 0 : index
    %c0_25 = arith.constant 0 : index
    %c0_26 = arith.constant 0 : index
    %36 = vector.load %arg6[%c0_23, %c0_24, %c0_25, %c0_26] : memref<1x4x8x8xf32, #tpu.memory_space<vmem>>, vector<1x4x8x8xf32>
    %37 = vector.shape_cast %36 : vector<1x4x8x8xf32> to vector<4x8x8xf32>
    %38 = vector.shape_cast %30 : vector<4x8x8xf32> to vector<1x4x8x8xf32>
    tpu.vector_store %arg6[%c0_23, %c0_24, %c0_25, %c0_26], %38 {strides = array<i32>} : memref<1x4x8x8xf32, #tpu.memory_space<vmem>>, vector<1x4x8x8xf32>,
    return
  }
  func.func @transform_0(%arg0: i32) -> (i32, i32, i32, i32) {
    %c0_i32 = arith.constant 0 : i32
    %c0_i32_0 = arith.constant 0 : i32
    %c0_i32_1 = arith.constant 0 : i32
    %c0_i32_2 = arith.constant 0 : i32
    return %arg0, %c0_i32, %c0_i32_0, %c0_i32_1 : i32, i32, i32, i32
  }
  func.func @transform_1(%arg0: i32) -> (i32, i32, i32, i32) {
    %c0_i32 = arith.constant 0 : i32
    %c0_i32_0 = arith.constant 0 : i32
    %c0_i32_1 = arith.constant 0 : i32
    %c0_i32_2 = arith.constant 0 : i32
    return %arg0, %c0_i32, %c0_i32_0, %c0_i32_1 : i32, i32, i32, i32
  }
  func.func @transform_2(%arg0: i32) -> (i32, i32, i32, i32) {
    %c0_i32 = arith.constant 0 : i32
    %c0_i32_0 = arith.constant 0 : i32
    %c0_i32_1 = arith.constant 0 : i32
    %c0_i32_2 = arith.constant 0 : i32
    return %arg0, %c0_i32, %c0_i32_0, %c0_i32_1 : i32, i32, i32, i32
  }
  func.func @transform_3(%arg0: i32) -> (i32, i32, i32) {
    %c0_i32 = arith.constant 0 : i32
    %c0_i32_0 = arith.constant 0 : i32
    %c0_i32_1 = arith.constant 0 : i32
    return %arg0, %c0_i32, %c0_i32_0 : i32, i32, i32
  }
  func.func @transform_4(%arg0: i32) -> (i32, i32, i32, i32) {
    %c0_i32 = arith.constant 0 : i32
    %c0_i32_0 = arith.constant 0 : i32
    %c0_i32_1 = arith.constant 0 : i32
    %c0_i32_2 = arith.constant 0 : i32
    return %arg0, %c0_i32, %c0_i32_0, %c0_i32_1 : i32, i32, i32, i32
  }
  func.func @transform_5(%arg0: i32) -> (i32, i32, i32, i32) {
    %c0_i32 = arith.constant 0 : i32
    %c0_i32_0 = arith.constant 0 : i32
    %c0_i32_1 = arith.constant 0 : i32
    %c0_i32_2 = arith.constant 0 : i32
    return %arg0, %c0_i32, %c0_i32_0, %c0_i32_1 : i32, i32, i32, i32
  }
}

module attributes {stable_mosaic.version = 11 : i64} {
  func.func @_linear_kernel(%arg0: i32, %arg1: memref<8x32xf32, #tpu.memory_space<vmem>>, %arg2: memref<32x50xbf16, #tpu.memory_space<vmem>>, %arg3: memref<1x50xf32, #tpu.memory_space<vmem>>, %arg4: memref<8x50xf32, #tpu.memory_space<vmem>>) attributes {dimension_semantics = [#tpu.dimension_semantics<parallel>], iteration_bounds = array<i64: 2>, scalar_prefetch = 0 : i64, scratch_operands = 0 : i64, tpu.core_type = #tpu.core_type<tc>, window_params = [{transform_indices = @transform_0, window_bounds = array<i64: 8, 32>}, {pipeline_mode = #tpu.pipeline_mode<synchronous>, transform_indices = @transform_1, window_bounds = array<i64: 32, 50>}, {pipeline_mode = #tpu.pipeline_mode<synchronous>, transform_indices = @transform_2, window_bounds = array<i64: 1, 50>}, {transform_indices = @transform_3, window_bounds = array<i64: 8, 50>}]} {
    %c0 = arith.constant 0 : index
    %c0_0 = arith.constant 0 : index
    %0 = vector.load %arg1[%c0, %c0_0] : memref<8x32xf32, #tpu.memory_space<vmem>>, vector<8x32xf32>
    %1 = arith.truncf %0 : vector<8x32xf32> to vector<8x32xbf16>
    %c0_1 = arith.constant 0 : index
    %c0_2 = arith.constant 0 : index
    %2 = vector.load %arg2[%c0_1, %c0_2] : memref<32x50xbf16, #tpu.memory_space<vmem>>, vector<32x50xbf16>
    %cst = arith.constant dense<0.000000e+00> : vector<8x50xf32>
    %3 = tpu.matmul %1, %2, %cst {dimension_numbers = #tpu.dot_dimension_numbers<[1], [0], [0], [1], [0, 0, 1, 1], [], []>} : vector<8x32xbf16>, vector<32x50xbf16>, vector<8x50xf32> -> vector<8x50xf32>
    %c0_3 = arith.constant 0 : index
    %c0_4 = arith.constant 0 : index
    %4 = vector.load %arg3[%c0_3, %c0_4] : memref<1x50xf32, #tpu.memory_space<vmem>>, vector<1x50xf32>
    %5 = vector.broadcast %4 : vector<1x50xf32> to vector<8x50xf32>
    %6 = arith.addf %3, %5 : vector<8x50xf32>
    %c0_5 = arith.constant 0 : index
    %c0_6 = arith.constant 0 : index
    %7 = vector.load %arg4[%c0_5, %c0_6] : memref<8x50xf32, #tpu.memory_space<vmem>>, vector<8x50xf32>
    tpu.vector_store %arg4[%c0_5, %c0_6], %6 {strides = array<i32>} : memref<8x50xf32, #tpu.memory_space<vmem>>, vector<8x50xf32>,
    return
  }
  func.func @transform_0(%arg0: i32) -> (i32, i32) {
    %c0_i32 = arith.constant 0 : i32
    %c0_i32_0 = arith.constant 0 : i32
    return %arg0, %c0_i32 : i32, i32
  }
  func.func @transform_1(%arg0: i32) -> (i32, i32) {
    %c0_i32 = arith.constant 0 : i32
    %c0_i32_0 = arith.constant 0 : i32
    %c0_i32_1 = arith.constant 0 : i32
    return %c0_i32, %c0_i32_0 : i32, i32
  }
  func.func @transform_2(%arg0: i32) -> (i32, i32) {
    %c0_i32 = arith.constant 0 : i32
    %c0_i32_0 = arith.constant 0 : i32
    %c0_i32_1 = arith.constant 0 : i32
    return %c0_i32, %c0_i32_0 : i32, i32
  }
  func.func @transform_3(%arg0: i32) -> (i32, i32) {
    %c0_i32 = arith.constant 0 : i32
    %c0_i32_0 = arith.constant 0 : i32
    return %arg0, %c0_i32 : i32, i32
  }
}

</mosaic_0001>

<bundles_post_ra>
// kernel: seq2seq_forward.39
= control target key start
LH: loop header
LB: loop body
LE: loop exit
PB: predicated region body
PF: predicated region fallthrough
CT: control target
= control target key end

     0   :  { %s318_s12 = smov 0   ;;  %s338_s0 = inlined_call_operand.vmem [shape: f32[16,32], index: 0, kind: input, shape index: {}]   ;;  %s339_s1 = inlined_call_operand.vmem [shape: bf16[32,96], index: 1, kind: input, shape index: {}]   ;;  %s340_s2 = inlined_call_operand.vmem [shape: f32[1,96], index: 2, kind: input, shape index: {}]   ;;  %s341_s3 = inlined_call_operand.vmem [shape: f32[16,96], index: 3, kind: output, shape index: {}]  }
   0x1 LB: > { %s261_s13 = sadd.s32 4294967295, %s296_s12   ;;  %p265_p0 = scmp.ge.s32.totalorder %s296_s12, 1  ;;  %s296_s12 = sphi %s318_s12, %s13_s12  }
   0x2   : > { %p136_p1 = scmp.lt.s32.totalorder %s296_s12, 3 }
   0x4   : > { %p137_p2 = pnand %p265_p0, %p136_p1 }
   0x5   : > { %p158_p3 = scmp.lt.s32.totalorder (!%p137_p2), %s261_s13, 1 }
   0x6   : > { %140 = sbr.rel (%p137_p2) target bundleno = 153 (0x99), region = 32 }
   0xb   : > { %v280_v0 = vld [vmem:[%s339_s1 + $0x8] sm:$0xff]  ;;  %v279_v1 = vld [vmem:[%s339_s1] sm:$0xff]  ;;  %s343_s13 = smov (!%p158_p3, %s261_s13), 1  ;;  %vm189_vm0 = vcmask 261120   ;;  %vm206_vm1 = vcmask 785408  }
   0xc   : > { %199 = vmatpush.bf16.msra.mxu0 %v280_v0  ;;  %s266_s18 = sshll.u32 %s343_s13, 3  ;;  %v289_v4 = vld [vmem:[%s340_s2] ss:$0 sm:$0xff] }
   0xd   : > { %s161_s21 = scalar_lea.vmem %s338_s0, %s266_s18  ;;  %s165_s26 = scalar_lea.vmem %s341_s3, %s266_s18 }
   0xe   : > { %v167_v2 = vld [vmem:[%s161_s21] sm:$0xff] }
   0xf   : > { %v168_v3 = vpack.c.bf16 %v167_v2, %v167_v2 }
  0x10   : > { %200 = vmatpush.bf16.msra.mxu0 %v279_v1 }
  0x13   : > { %276 = vmatmul.msk.bf16.vlgmr.msra.gmra.mxu0 %vm189_vm0, %v168_v3 }
  0x90   : > { %v202_v5 = vpop.f32.mrf.mxu0 }
  0x91   : > { %v203_v6 = vadd.f32 %v289_v4, %v202_v5 }
  0x93   : > { %207 = vst.msk [vmem:[%s165_s26] sm:$0xff] %vm206_vm1, %v203_v6 }
  0x98   : > { %v204_v7 = vpop.f32.mrf.mxu0 }
  0x99 PF: > { %s13_s12 = sadd.s32 1, %s296_s12  }
  0x9a   : > { %p10_p4 = scmp.ge.s32.totalorder %s13_s12, 4  }
  0x9c   :  { %12 = sbr.rel (!%p10_p4) target bundleno = 1 (0x1), region = 62 }

// kernel: seq2seq_forward.42
= control target key start
LH: loop header
LB: loop body
LE: loop exit
PB: predicated region body
PF: predicated region fallthrough
CT: control target
= control target key end

     0   :  { %s317_s12 = smov 0   ;;  %s337_s0 = inlined_call_operand.vmem [shape: f32[16,32], index: 0, kind: input, shape index: {}]   ;;  %s338_s1 = inlined_call_operand.vmem [shape: bf16[32,32], index: 1, kind: input, shape index: {}]   ;;  %s339_s2 = inlined_call_operand.vmem [shape: f32[1,32], index: 2, kind: input, shape index: {}]   ;;  %s340_s3 = inlined_call_operand.vmem [shape: f32[16,32], index: 3, kind: output, shape index: {}]  }
   0x1 LB: > { %s260_s13 = sadd.s32 4294967295, %s295_s12   ;;  %p264_p0 = scmp.ge.s32.totalorder %s295_s12, 1  ;;  %s295_s12 = sphi %s317_s12, %s13_s12  }
   0x2   : > { %p136_p1 = scmp.lt.s32.totalorder %s295_s12, 3 }
   0x4   : > { %p137_p2 = pnand %p264_p0, %p136_p1 }
   0x5   : > { %p158_p3 = scmp.lt.s32.totalorder (!%p137_p2), %s260_s13, 1 }
   0x6   : > { %140 = sbr.rel (%p137_p2) target bundleno = 153 (0x99), region = 32 }
   0xb   : > { %v279_v0 = vld [vmem:[%s338_s1 + $0x8] sm:$0xff]  ;;  %v278_v1 = vld [vmem:[%s338_s1] sm:$0xff]  ;;  %s342_s13 = smov (!%p158_p3, %s260_s13), 1  ;;  %vm189_vm0 = vcmask 261120  }
   0xc   : > { %199 = vmatpush.bf16.msra.mxu0 %v279_v0  ;;  %s265_s18 = sshll.u32 %s342_s13, 3  ;;  %v288_v4 = vld [vmem:[%s339_s2] ss:$0 sm:$0xff] }
   0xd   : > { %s161_s21 = scalar_lea.vmem %s337_s0, %s265_s18  ;;  %s165_s26 = scalar_lea.vmem %s340_s3, %s265_s18 }
   0xe   : > { %v167_v2 = vld [vmem:[%s161_s21] sm:$0xff] }
   0xf   : > { %v168_v3 = vpack.c.bf16 %v167_v2, %v167_v2 }
  0x10   : > { %200 = vmatpush.bf16.msra.mxu0 %v278_v1 }
  0x13   : > { %275 = vmatmul.msk.bf16.vlgmr.msra.gmra.mxu0 %vm189_vm0, %v168_v3 }
  0x90   : > { %v202_v5 = vpop.f32.mrf.mxu0 }
  0x91   : > { %v203_v6 = vadd.f32 %v288_v4, %v202_v5 }
  0x93   : > { %206 = vst.msk [vmem:[%s165_s26] sm:$0xff] %vm189_vm0, %v203_v6 }
  0x98   : > { %v204_v7 = vpop.f32.mrf.mxu0 }
  0x99 PF: > { %s13_s12 = sadd.s32 1, %s295_s12  }
  0x9a   : > { %p10_p4 = scmp.ge.s32.totalorder %s13_s12, 4  }
  0x9c   :  { %12 = sbr.rel (!%p10_p4) target bundleno = 1 (0x1), region = 62 }

// kernel: seq2seq_forward.41
= control target key start
LH: loop header
LB: loop body
LE: loop exit
PB: predicated region body
PF: predicated region fallthrough
CT: control target
= control target key end

     0   :  { %s492_s21 = smov 0   ;;  %s536_s0 = inlined_call_operand.vmem [shape: f32[16,32], index: 0, kind: input, shape index: {}]   ;;  %s537_s1 = inlined_call_operand.vmem [shape: bf16[32,32], index: 1, kind: input, shape index: {}]   ;;  %s538_s2 = inlined_call_operand.vmem [shape: f32[1,32], index: 2, kind: input, shape index: {}]   ;;  %s539_s3 = inlined_call_operand.vmem [shape: f32[16,32], index: 3, kind: input, shape index: {}]   ;;  %s540_s4 = inlined_call_operand.vmem [shape: f32[1,32], index: 4, kind: input, shape index: {}]   ;;  %s541_s5 = inlined_call_operand.vmem [shape: f32[1,32], index: 5, kind: input, shape index: {}]   ;;  %s542_s6 = inlined_call_operand.vmem [shape: f32[16,32], index: 6, kind: output, shape index: {}]  }
   0x1 LB: > { %s411_s22 = sadd.s32 4294967295, %s454_s21   ;;  %p415_p0 = scmp.ge.s32.totalorder %s454_s21, 1  ;;  %s454_s21 = sphi %s492_s21, %s16_s21  }
   0x2   : > { %p220_p1 = scmp.lt.s32.totalorder %s454_s21, 3 }
   0x4   : > { %p221_p2 = pnand %p415_p0, %p220_p1 }
   0x5   : > { %p252_p3 = scmp.lt.s32.totalorder (!%p221_p2), %s411_s22, 1 }
   0x6   : > { %224 = sbr.rel (%p221_p2) target bundleno = 418 (0x1a2), region = 44 }
   0xb   : > { %v431_v0 = vld [vmem:[%s537_s1 + $0x8] sm:$0xff]  ;;  %v430_v1 = vld [vmem:[%s537_s1] sm:$0xff]  ;;  %s544_s22 = smov (!%p252_p3, %s411_s22), 1  ;;  %vm287_vm0 = vcmask 261120   ;;  %v456_v11 = vmov 32.0  }
   0xc   : > { %297 = vmatpush.bf16.msra.mxu0 %v431_v0  ;;  %s506_s27 = sshll.u32 %s544_s22, 3  ;;  %v441_v4 = vld [vmem:[%s538_s2] ss:$0 sm:$0xff]  ;;  %444 = vrcp.f32 %v456_v11 }
   0xd   : > { %s255_s30 = scalar_lea.vmem %s536_s0, %s506_s27  ;;  %s259_s11 = scalar_lea.vmem %s539_s3, %s506_s27  ;;  %v442_v32 = vld [vmem:[%s540_s4] ss:$0 sm:$0xff] }
   0xe   : > { %v265_v2 = vld [vmem:[%s255_s30] sm:$0xff]  ;;  %s263_s18 = scalar_lea.vmem %s542_s6, %s506_s27 }
   0xf   : > { %v266_v3 = vpack.c.bf16 %v265_v2, %v265_v2  ;;  %v304_v6 = vld [vmem:[%s259_s11] sm:$0xff] }
  0x10   : > { %298 = vmatpush.bf16.msra.mxu0 %v430_v1  ;;  %v443_v34 = vld [vmem:[%s541_s5] ss:$0 sm:$0xff] }
  0x12   : > { %v445_v12 = vpop.eup %444 }
  0x13   : > { %427 = vmatmul.msk.bf16.vlgmr.msra.gmra.mxu0 %vm287_vm0, %v266_v3  ;;  %v310_v13 = vmul.f32 32.0, %v445_v12  ;;  %vm314_vm1 = vweird.f32 %v445_v12 }
  0x15   : > { %v311_v14 = vsub.f32 1.0, %v310_v13 }
  0x17   : > { %v312_v15 = vmul.f32 %v445_v12, %v311_v14 }
  0x19   : > { %v313_v16 = vadd.f32 %v445_v12, %v312_v15 }
  0x1b   : > { %v315_v17 = vsel %vm314_vm1, %v445_v12, %v313_v16 }
  0x90   : > { %v300_v5 = vpop.f32.mrf.mxu0 }
  0x91   : > { %v301_v7 = vadd.f32 %v441_v4, %v300_v5 }
  0x93   : > { %v305_v8 = vadd.f32 %v304_v6, %v301_v7 }
  0x95   : > { %v306_v9 = vsel %vm287_vm0, %v305_v8, 0.0 }
  0x96   : > { %307 = vadd.xlane.f32.xlu0 %v306_v9 }
  0x98   : > { %v302_v10 = vpop.f32.mrf.mxu0 }
 0x109   : > { %v308_v18 = vpop.xlane.xlu0 %307 }
 0x10a   : > { %v316_v19 = vmul.f32 %v315_v17, %v308_v18 }
 0x10c   : > { %v317_v20 = vsub.f32 %v305_v8, %v316_v19 }
 0x10e   : > { %v318_v21 = vmul.f32 %v317_v20, %v317_v20 }
 0x110   : > { %v319_v22 = vsel %vm287_vm0, %v318_v21, 0.0 }
 0x111   : > { %320 = vadd.xlane.f32.xlu0 %v319_v22 }
 0x184   : > { %v321_v23 = vpop.xlane.xlu0 %320 }
 0x185   : > { %v322_v24 = vmul.f32 %v321_v23, %v315_v17 }
 0x187   : > { %v323_v25 = vadd.f32 1e-05, %v322_v24 }
 0x189   : > { %446 = vrsqrt.f32 %v323_v25  ;;  %vm330_vm3 = vweird.f32 %v323_v25 }
 0x18f   : > { %v447_v26 = vpop.eup %446 }
 0x190   : > { %v325_v27 = vmul.f32 %v447_v26, %v323_v25  ;;  %vm331_vm2 = vweird.f32 %v447_v26 }
 0x191   : > { %vm332_vm4 = vmor %vm330_vm3, %vm331_vm2 }
 0x192   : > { %v326_v28 = vmul.f32 %v447_v26, %v325_v27 }
 0x194   : > { %v327_v29 = vmul.f32 0.5, %v326_v28 }
 0x196   : > { %v328_v30 = vsub.f32 1.5, %v327_v29 }
 0x198   : > { %v329_v31 = vmul.f32 %v447_v26, %v328_v30 }
 0x19a   : > { %v333_v33 = vsel %vm332_vm4, %v447_v26, %v329_v31 }
 0x19b   : > { %v334_v35 = vmul.f32 %v333_v33, %v317_v20 }
 0x19d   : > { %v339_v36 = vmul.f32 %v442_v32, %v334_v35 }
 0x19f   : > { %v344_v37 = vadd.f32 %v443_v34, %v339_v36 }
 0x1a1   : > { %345 = vst.msk [vmem:[%s263_s18] sm:$0xff] %vm287_vm0, %v344_v37 }
 0x1a2 PF: > { %s16_s21 = sadd.s32 1, %s454_s21  }
 0x1a3   : > { %p13_p4 = scmp.ge.s32.totalorder %s16_s21, 4  }
 0x1a5   :  { %15 = sbr.rel (!%p13_p4) target bundleno = 1 (0x1), region = 77 }

// kernel: seq2seq_forward.40
= control target key start
LH: loop header
LB: loop body
LE: loop exit
PB: predicated region body
PF: predicated region fallthrough
CT: control target
= control target key end

     0   :  { %s678_s15 = smov 0   ;;  %s750_s0 = inlined_call_operand.vmem [shape: f32[2,4,8,8], index: 0, kind: input, shape index: {}]   ;;  %s751_s1 = inlined_call_operand.vmem [shape: f32[2,4,8,8], index: 1, kind: input, shape index: {}]   ;;  %s752_s2 = inlined_call_operand.vmem [shape: f32[2,4,8,8], index: 2, kind: input, shape index: {}]   ;;  %s753_s3 = inlined_call_operand.vmem [shape: s32[2,1,8], index: 3, kind: input, shape index: {}]   ;;  %s754_s4 = inlined_call_operand.vmem [shape: f32[2,4,8,8], index: 4, kind: output, shape index: {}]  }
   0x1 LB: > { %s592_s16 = sadd.s32 4294967295, %s650_s15   ;;  %p596_p0 = scmp.ge.s32.totalorder %s650_s15, 1  ;;  %s650_s15 = sphi %s678_s15, %s14_s15  }
   0x2   : > { %p190_p1 = scmp.lt.s32.totalorder %s650_s15, 3 }
   0x4   : > { %p191_p2 = pnand %p596_p0, %p190_p1 }
   0x5   : > { %p229_p3 = scmp.lt.s32.totalorder (!%p191_p2), %s592_s16, 1 }
   0x6   : > { %194 = sbr.rel (%p191_p2) target bundleno = 564 (0x234), region = 36 }
   0xb   : > { %s758_s16 = smov (!%p229_p3, %s592_s16), 1  ;;  %vm278_vm0 = vcmask 64512   ;;  %v360_v21 = vlaneseq  ;;  %v652_v22 = vmov 0   ;;  %vm426_vm5 = vcmask 1043456  }
   0xc   : > { %s689_s17 = sshll.u32 %s758_s16, 5  ;;  %s246_s26 = scalar_lea.vmem %s753_s3, %s758_s16 }
   0xd   : > { %s238_s20 = scalar_lea.vmem %s751_s1, %s689_s17  ;;  %s233_s23 = scalar_lea.vmem %s750_s0, %s689_s17  ;;  %v277_v20 = vld [vmem:[%s246_s26] sm:$0x1]  ;;  %v361_v24 = vshrl.u32 %v360_v21, 7  ;;  %v363_v25 = vand.u32 127, %v360_v21 }
   0xe   : > { %v261_v0 = vld [vmem:[%s238_s20] sm:$0xff]  ;;  %v263_v1 = vld [vmem:[%s238_s20 + $0x10] sm:$0xff]  ;;  %v264_v2 = vld [vmem:[%s238_s20 + $0x18] sm:$0xff]  ;;  %vm359_vm1 = vcmp.ne.s32.totalorder %v277_v20, 0  ;;  %s243_s29 = scalar_lea.vmem %s752_s2, %s689_s17  ;;  %s251_s6 = scalar_lea.vmem %s754_s4, %s689_s17 }
   0xf   : > { %v265_v3 = vpack.c.bf16 %v261_v0, %v261_v0  ;;  %v267_v4 = vpack.c.bf16 %v263_v1, %v263_v1  ;;  %v268_v5 = vpack.c.bf16 %v264_v2, %v264_v2  ;;  %v262_v6 = vld [vmem:[%s238_s20 + $0x8] sm:$0xff]  ;;  %v253_v11 = vld [vmem:[%s233_s23] sm:$0xff]  ;;  %v255_v12 = vld [vmem:[%s233_s23 + $0x10] sm:$0xff]  ;;  %v365_v23 = vsel %vm359_vm1, 1, %v652_v22 }
  0x10   : > { %v266_v10 = vpack.c.bf16 %v262_v6, %v262_v6  ;;  %v256_v13 = vld [vmem:[%s233_s23 + $0x18] sm:$0xff]  ;;  %v254_v15 = vld [vmem:[%s233_s23 + $0x8] sm:$0xff]  ;;  %v257_v16 = vpack.c.bf16 %v253_v11, %v253_v11  ;;  %v259_v17 = vpack.c.bf16 %v255_v12, %v255_v12  ;;  %v366_v26 = vperm.slane %v365_v23, 0 }
  0x11   : > { %v283_v7 = vsel %vm278_vm0, %v265_v3, 0  ;;  %v321_v8 = vsel %vm278_vm0, %v267_v4, 0  ;;  %v340_v9 = vsel %vm278_vm0, %v268_v5, 0  ;;  %v260_v18 = vpack.c.bf16 %v256_v13, %v256_v13  ;;  %v269_v4 = vld [vmem:[%s243_s29] sm:$0xff]  ;;  %v272_v13 = vld [vmem:[%s243_s29 + $0x18] sm:$0xff] }
  0x12   : > { %292 = vmatpush.bf16.xpose.msra.mxu0 %v283_v7  ;;  %330 = vmatpush.bf16.xpose.msra.mxu2 %v321_v8  ;;  %v302_v14 = vsel %vm278_vm0, %v266_v10, 0  ;;  %v258_v19 = vpack.c.bf16 %v254_v15, %v254_v15  ;;  %vm364_vm2 = vcmp.le.s32.totalorder %v363_v25, %v361_v24  ;;  %vm367_vm3 = vcmp.eq.s32.totalorder %v366_v26, 1  ;;  %v271_v7 = vld [vmem:[%s243_s29 + $0x10] sm:$0xff] }
  0x13   : > { %349 = vmatpush.bf16.xpose.msra.mxu3 %v340_v9  ;;  %311 = vmatpush.bf16.xpose.msra.mxu1 %v302_v14  ;;  %vm711_vm4 = vmand %vm367_vm3, %vm364_vm2  ;;  %v273_v5 = vpack.c.bf16 %v269_v4, %v269_v4  ;;  %v275_v8 = vpack.c.bf16 %v271_v7, %v271_v7  ;;  %v270_v9 = vld [vmem:[%s243_s29 + $0x8] sm:$0xff]  ;;  %v276_v14 = vpack.c.bf16 %v272_v13, %v272_v13 }
  0x14   : > { %v274_v11 = vpack.c.bf16 %v270_v9, %v270_v9 }
  0x15   : > { %v428_v6 = vsel %vm426_vm5, %v273_v5, 0  ;;  %v466_v10 = vsel %vm426_vm5, %v275_v8, 0  ;;  %v485_v15 = vsel %vm426_vm5, %v276_v14, 0 }
  0x16   : > { %v447_v12 = vsel %vm426_vm5, %v274_v11, 0 }
  0x19   : > { %605 = vmatmul.msk.bf16.vlgmr.msra.gmra.mxu0 %vm278_vm0, %v257_v16  ;;  %607 = vmatmul.msk.bf16.vlgmr.msra.gmra.mxu2 %vm278_vm0, %v259_v17 }
  0x1a   : > { %608 = vmatmul.msk.bf16.vlgmr.msra.gmra.mxu3 %vm278_vm0, %v260_v18  ;;  %606 = vmatmul.msk.bf16.vlgmr.msra.gmra.mxu1 %vm278_vm0, %v258_v19 }
  0x1b   : > { %437 = vmatpush.bf16.msrb.mxu0 %v428_v6  ;;  %475 = vmatpush.bf16.msrb.mxu2 %v466_v10 }
  0x1c   : > { %456 = vmatpush.bf16.msrb.mxu1 %v447_v12  ;;  %494 = vmatpush.bf16.msrb.mxu3 %v485_v15 }
  0x96   : > { %v294_v27 = vpop.f32.mrf.mxu0 }
  0x97   : > { %v355_v29 = vmul.f32 0.35355338, %v294_v27  ;;  %v313_v30 = vpop.f32.mrf.mxu1 }
  0x98   : > { %v356_v32 = vmul.f32 0.35355338, %v313_v30 }
  0x99   : > { %v371_v31 = vsel %vm711_vm4, %v355_v29, -1e+10 }
  0x9a   : > { %v375_v33 = vsel %vm278_vm0, %v371_v31, -inf  ;;  %v372_v37 = vsel %vm711_vm4, %v356_v32, -1e+10 }
  0x9b   : > { %376 = vmax.xlane.f32.xlu1 %v375_v33  ;;  %v378_v42 = vsel %vm278_vm0, %v372_v37, -inf }
  0x9c   : > { %v332_v34 = vpop.f32.mrf.mxu2 }
  0x9d   : > { %v357_v35 = vmul.f32 0.35355338, %v332_v34  ;;  %v351_v36 = vpop.f32.mrf.mxu3 }
  0x9e   : > { %v296_v38 = vpop.f32.mrf.mxu0  ;;  %v358_v39 = vmul.f32 0.35355338, %v351_v36 }
  0x9f   : > { %v373_v40 = vsel %vm711_vm4, %v357_v35, -1e+10  ;;  %v315_v43 = vpop.f32.mrf.mxu1 }
  0xa0   : > { %v381_v41 = vsel %vm278_vm0, %v373_v40, -inf  ;;  %v374_v44 = vsel %vm711_vm4, %v358_v39, -1e+10 }
  0xa1   : > { %382 = vmax.xlane.f32.xlu0 %v381_v41  ;;  %v384_v47 = vsel %vm278_vm0, %v374_v44, -inf }
  0xa3   : > { %379 = vmax.xlane.f32.xlu1 %v378_v42 }
  0xa4   : > { %v334_v45 = vpop.f32.mrf.mxu2 }
  0xa5   : > { %v353_v46 = vpop.f32.mrf.mxu3 }
  0xa9   : > { %385 = vmax.xlane.f32.xlu0 %v384_v47 }
 0x10e   : > { %v377_v48 = vpop.xlane.xlu1 %376 }
 0x10f   : > { %v387_v49 = vsub.f32 %v371_v31, %v377_v48 }
 0x111   : > { %v391_v50 = vmul.f32 1.442695, %v387_v49 }
 0x113   : > { %628 = vpow2.f32 %v391_v50 }
 0x114   : > { %v383_v51 = vpop.xlane.xlu0 %382 }
 0x115   : > { %v389_v52 = vsub.f32 %v373_v40, %v383_v51 }
 0x116   : > { %v380_v53 = vpop.xlane.xlu1 %379 }
 0x117   : > { %v395_v54 = vmul.f32 1.442695, %v389_v52  ;;  %v388_v55 = vsub.f32 %v372_v37, %v380_v53 }
 0x119   : > { %v629_v56 = vpop.eup %628  ;;  %630 = vpow2.f32 %v395_v54  ;;  %v393_v57 = vmul.f32 1.442695, %v388_v55 }
 0x11a   : > { %v399_v58 = vsel %vm278_vm0, %v629_v56, 0.0 }
 0x11b   : > { %632 = vpow2.f32 %v393_v57  ;;  %400 = vadd.xlane.f32.xlu0 %v399_v58 }
 0x11c   : > { %v386_v59 = vpop.xlane.xlu0 %385 }
 0x11d   : > { %v390_v60 = vsub.f32 %v374_v44, %v386_v59 }
 0x11f   : > { %v631_v61 = vpop.eup %630  ;;  %v397_v62 = vmul.f32 1.442695, %v390_v60 }
 0x120   : > { %v405_v63 = vsel %vm278_vm0, %v631_v61, 0.0 }
 0x121   : > { %v633_v0 = vpop.eup %632  ;;  %634 = vpow2.f32 %v397_v62  ;;  %406 = vadd.xlane.f32.xlu2 %v405_v63 }
 0x122   : > { %v402_v1 = vsel %vm278_vm0, %v633_v0, 0.0 }
 0x123   : > { %403 = vadd.xlane.f32.xlu1 %v402_v1 }
 0x127   : > { %v635_v2 = vpop.eup %634 }
 0x128   : > { %v408_v3 = vsel %vm278_vm0, %v635_v2, 0.0 }
 0x129   : > { %409 = vadd.xlane.f32.xlu2 %v408_v3 }
 0x18e   : > { %v401_v16 = vpop.xlane.xlu0 %400 }
 0x18f   : > { %636 = vrcp.f32 %v401_v16 }
 0x194   : > { %v407_v17 = vpop.xlane.xlu2 %406 }
 0x195   : > { %v637_v18 = vpop.eup %636  ;;  %638 = vrcp.f32 %v407_v17 }
 0x196   : > { %v415_v19 = vmul.f32 %v637_v18, %v629_v56  ;;  %v404_v20 = vpop.xlane.xlu1 %403 }
 0x197   : > { %640 = vrcp.f32 %v404_v20 }
 0x198   : > { %v419_v21 = vpack.c.bf16 %v415_v19, %v415_v19 }
 0x19a   : > { %609 = vmatmul.msk.bf16.vlgmr.msrb.gmra.mxu0 %vm278_vm0, %v419_v21 }
 0x19b   : > { %v639_v22 = vpop.eup %638 }
 0x19c   : > { %v417_v23 = vmul.f32 %v639_v22, %v631_v61  ;;  %v410_v24 = vpop.xlane.xlu2 %409 }
 0x19d   : > { %v641_v25 = vpop.eup %640  ;;  %642 = vrcp.f32 %v410_v24 }
 0x19e   : > { %v416_v26 = vmul.f32 %v641_v25, %v633_v0  ;;  %v421_v27 = vpack.c.bf16 %v417_v23, %v417_v23 }
 0x1a0   : > { %v420_v28 = vpack.c.bf16 %v416_v26, %v416_v26  ;;  %611 = vmatmul.msk.bf16.vlgmr.msrb.gmra.mxu2 %vm278_vm0, %v421_v27 }
 0x1a2   : > { %610 = vmatmul.msk.bf16.vlgmr.msrb.gmra.mxu1 %vm278_vm0, %v420_v28 }
 0x1a3   : > { %v643_v29 = vpop.eup %642 }
 0x1a4   : > { %v418_v30 = vmul.f32 %v643_v29, %v635_v2 }
 0x1a6   : > { %v422_v31 = vpack.c.bf16 %v418_v30, %v418_v30 }
 0x1a8   : > { %612 = vmatmul.msk.bf16.vlgmr.msrb.gmra.mxu3 %vm278_vm0, %v422_v31 }
 0x217   : > { %v439_v32 = vpop.f32.mrf.mxu0 }
 0x218   : > { %500 = vst.msk [vmem:[%s251_s6] sm:$0xff] %vm278_vm0, %v439_v32 }
 0x21f   : > { %v441_v33 = vpop.f32.mrf.mxu0  ;;  %v458_v34 = vpop.f32.mrf.mxu1 }
 0x220   : > { %501 = vst.msk [vmem:[%s251_s6 + $0x8] sm:$0xff] %vm278_vm0, %v458_v34 }
 0x223   : > { %v477_v35 = vpop.f32.mrf.mxu2 }
 0x224   : > { %502 = vst.msk [vmem:[%s251_s6 + $0x10] sm:$0xff] %vm278_vm0, %v477_v35 }
 0x227   : > { %v460_v36 = vpop.f32.mrf.mxu1 }
 0x22b   : > { %v479_v37 = vpop.f32.mrf.mxu2  ;;  %v496_v38 = vpop.f32.mrf.mxu3 }
 0x22c   : > { %503 = vst.msk [vmem:[%s251_s6 + $0x18] sm:$0xff] %vm278_vm0, %v496_v38 }
 0x233   : > { %v498_v39 = vpop.f32.mrf.mxu3 }
 0x234 PF: > { %s14_s15 = sadd.s32 1, %s650_s15  }
 0x235   : > { %p11_p4 = scmp.ge.s32.totalorder %s14_s15, 4  }
 0x237   :  { %13 = sbr.rel (!%p11_p4) target bundleno = 1 (0x1), region = 75 }

// kernel: seq2seq_forward.30
= control target key start
LH: loop header
LB: loop body
LE: loop exit
PB: predicated region body
PF: predicated region fallthrough
CT: control target
= control target key end

     0   :  { %s670_s15 = smov 0   ;;  %s742_s0 = inlined_call_operand.vmem [shape: f32[2,4,8,8], index: 0, kind: input, shape index: {}]   ;;  %s743_s1 = inlined_call_operand.vmem [shape: f32[2,4,8,8], index: 1, kind: input, shape index: {}]   ;;  %s744_s2 = inlined_call_operand.vmem [shape: f32[2,4,8,8], index: 2, kind: input, shape index: {}]   ;;  %s745_s3 = inlined_call_operand.vmem [shape: s32[2,1,8], index: 3, kind: input, shape index: {}]   ;;  %s746_s4 = inlined_call_operand.vmem [shape: f32[2,4,8,8], index: 4, kind: output, shape index: {}]  }
   0x1 LB: > { %s584_s16 = sadd.s32 4294967295, %s642_s15   ;;  %p588_p0 = scmp.ge.s32.totalorder %s642_s15, 1  ;;  %s642_s15 = sphi %s670_s15, %s14_s15  }
   0x2   : > { %p190_p1 = scmp.lt.s32.totalorder %s642_s15, 3 }
   0x4   : > { %p191_p2 = pnand %p588_p0, %p190_p1 }
   0x5   : > { %p229_p3 = scmp.lt.s32.totalorder (!%p191_p2), %s584_s16, 1 }
   0x6   : > { %194 = sbr.rel (%p191_p2) target bundleno = 564 (0x234), region = 36 }
   0xb   : > { %s750_s16 = smov (!%p229_p3, %s584_s16), 1  ;;  %vm278_vm0 = vcmask 64512   ;;  %v644_v21 = vmov 0   ;;  %vm418_vm3 = vcmask 1043456  }
   0xc   : > { %s681_s17 = sshll.u32 %s750_s16, 5  ;;  %s246_s26 = scalar_lea.vmem %s745_s3, %s750_s16 }
   0xd   : > { %s238_s20 = scalar_lea.vmem %s743_s1, %s681_s17  ;;  %s233_s23 = scalar_lea.vmem %s742_s0, %s681_s17  ;;  %v277_v20 = vld [vmem:[%s246_s26] sm:$0x1] }
   0xe   : > { %v261_v0 = vld [vmem:[%s238_s20] sm:$0xff]  ;;  %v263_v1 = vld [vmem:[%s238_s20 + $0x10] sm:$0xff]  ;;  %v264_v2 = vld [vmem:[%s238_s20 + $0x18] sm:$0xff]  ;;  %vm359_vm1 = vcmp.ne.s32.totalorder %v277_v20, 0  ;;  %s243_s29 = scalar_lea.vmem %s744_s2, %s681_s17  ;;  %s251_s6 = scalar_lea.vmem %s746_s4, %s681_s17 }
   0xf   : > { %v265_v3 = vpack.c.bf16 %v261_v0, %v261_v0  ;;  %v267_v4 = vpack.c.bf16 %v263_v1, %v263_v1  ;;  %v268_v5 = vpack.c.bf16 %v264_v2, %v264_v2  ;;  %v262_v6 = vld [vmem:[%s238_s20 + $0x8] sm:$0xff]  ;;  %v253_v11 = vld [vmem:[%s233_s23] sm:$0xff]  ;;  %v255_v12 = vld [vmem:[%s233_s23 + $0x10] sm:$0xff]  ;;  %v360_v22 = vsel %vm359_vm1, 1, %v644_v21 }
  0x10   : > { %v266_v10 = vpack.c.bf16 %v262_v6, %v262_v6  ;;  %v256_v13 = vld [vmem:[%s233_s23 + $0x18] sm:$0xff]  ;;  %v254_v15 = vld [vmem:[%s233_s23 + $0x8] sm:$0xff]  ;;  %v257_v16 = vpack.c.bf16 %v253_v11, %v253_v11  ;;  %v259_v17 = vpack.c.bf16 %v255_v12, %v255_v12  ;;  %v361_v23 = vperm.slane %v360_v22, 0  ;;  %v269_v1 = vld [vmem:[%s243_s29] sm:$0xff] }
  0x11   : > { %v283_v7 = vsel %vm278_vm0, %v265_v3, 0  ;;  %v321_v8 = vsel %vm278_vm0, %v267_v4, 0  ;;  %v340_v9 = vsel %vm278_vm0, %v268_v5, 0  ;;  %v260_v18 = vpack.c.bf16 %v256_v13, %v256_v13  ;;  %v271_v4 = vld [vmem:[%s243_s29 + $0x10] sm:$0xff]  ;;  %v270_v6 = vld [vmem:[%s243_s29 + $0x8] sm:$0xff] }
  0x12   : > { %292 = vmatpush.bf16.xpose.msra.mxu0 %v283_v7  ;;  %330 = vmatpush.bf16.xpose.msra.mxu2 %v321_v8  ;;  %v302_v14 = vsel %vm278_vm0, %v266_v10, 0  ;;  %v258_v19 = vpack.c.bf16 %v254_v15, %v254_v15  ;;  %vm703_vm2 = vcmp.eq.s32.totalorder %v361_v23, 1  ;;  %v273_v2 = vpack.c.bf16 %v269_v1, %v269_v1  ;;  %v272_v10 = vld [vmem:[%s243_s29 + $0x18] sm:$0xff] }
  0x13   : > { %349 = vmatpush.bf16.xpose.msra.mxu3 %v340_v9  ;;  %311 = vmatpush.bf16.xpose.msra.mxu1 %v302_v14  ;;  %v275_v5 = vpack.c.bf16 %v271_v4, %v271_v4  ;;  %v274_v8 = vpack.c.bf16 %v270_v6, %v270_v6  ;;  %v276_v11 = vpack.c.bf16 %v272_v10, %v272_v10 }
  0x14   : > { %v420_v3 = vsel %vm418_vm3, %v273_v2, 0 }
  0x15   : > { %v458_v7 = vsel %vm418_vm3, %v275_v5, 0  ;;  %v439_v9 = vsel %vm418_vm3, %v274_v8, 0  ;;  %v477_v12 = vsel %vm418_vm3, %v276_v11, 0 }
  0x19   : > { %597 = vmatmul.msk.bf16.vlgmr.msra.gmra.mxu0 %vm278_vm0, %v257_v16  ;;  %599 = vmatmul.msk.bf16.vlgmr.msra.gmra.mxu2 %vm278_vm0, %v259_v17 }
  0x1a   : > { %600 = vmatmul.msk.bf16.vlgmr.msra.gmra.mxu3 %vm278_vm0, %v260_v18  ;;  %598 = vmatmul.msk.bf16.vlgmr.msra.gmra.mxu1 %vm278_vm0, %v258_v19 }
  0x1b   : > { %429 = vmatpush.bf16.msrb.mxu0 %v420_v3  ;;  %467 = vmatpush.bf16.msrb.mxu2 %v458_v7 }
  0x1c   : > { %448 = vmatpush.bf16.msrb.mxu1 %v439_v9  ;;  %486 = vmatpush.bf16.msrb.mxu3 %v477_v12 }
  0x96   : > { %v294_v24 = vpop.f32.mrf.mxu0 }
  0x97   : > { %v355_v26 = vmul.f32 0.35355338, %v294_v24  ;;  %v313_v27 = vpop.f32.mrf.mxu1 }
  0x98   : > { %v356_v29 = vmul.f32 0.35355338, %v313_v27 }
  0x99   : > { %v363_v28 = vsel %vm703_vm2, %v355_v26, -1e+10 }
  0x9a   : > { %v367_v30 = vsel %vm278_vm0, %v363_v28, -inf  ;;  %v364_v34 = vsel %vm703_vm2, %v356_v29, -1e+10 }
  0x9b   : > { %368 = vmax.xlane.f32.xlu1 %v367_v30  ;;  %v370_v39 = vsel %vm278_vm0, %v364_v34, -inf }
  0x9c   : > { %v332_v31 = vpop.f32.mrf.mxu2 }
  0x9d   : > { %v357_v32 = vmul.f32 0.35355338, %v332_v31  ;;  %v351_v33 = vpop.f32.mrf.mxu3 }
  0x9e   : > { %v296_v35 = vpop.f32.mrf.mxu0  ;;  %v358_v36 = vmul.f32 0.35355338, %v351_v33 }
  0x9f   : > { %v365_v37 = vsel %vm703_vm2, %v357_v32, -1e+10  ;;  %v315_v40 = vpop.f32.mrf.mxu1 }
  0xa0   : > { %v373_v38 = vsel %vm278_vm0, %v365_v37, -inf  ;;  %v366_v41 = vsel %vm703_vm2, %v358_v36, -1e+10 }
  0xa1   : > { %374 = vmax.xlane.f32.xlu0 %v373_v38  ;;  %v376_v44 = vsel %vm278_vm0, %v366_v41, -inf }
  0xa3   : > { %371 = vmax.xlane.f32.xlu1 %v370_v39 }
  0xa4   : > { %v334_v42 = vpop.f32.mrf.mxu2 }
  0xa5   : > { %v353_v43 = vpop.f32.mrf.mxu3 }
  0xa9   : > { %377 = vmax.xlane.f32.xlu0 %v376_v44 }
 0x10e   : > { %v369_v45 = vpop.xlane.xlu1 %368 }
 0x10f   : > { %v379_v46 = vsub.f32 %v363_v28, %v369_v45 }
 0x111   : > { %v383_v47 = vmul.f32 1.442695, %v379_v46 }
 0x113   : > { %620 = vpow2.f32 %v383_v47 }
 0x114   : > { %v375_v48 = vpop.xlane.xlu0 %374 }
 0x115   : > { %v381_v49 = vsub.f32 %v365_v37, %v375_v48 }
 0x116   : > { %v372_v50 = vpop.xlane.xlu1 %371 }
 0x117   : > { %v387_v51 = vmul.f32 1.442695, %v381_v49  ;;  %v380_v52 = vsub.f32 %v364_v34, %v372_v50 }
 0x119   : > { %v621_v53 = vpop.eup %620  ;;  %622 = vpow2.f32 %v387_v51  ;;  %v385_v54 = vmul.f32 1.442695, %v380_v52 }
 0x11a   : > { %v391_v55 = vsel %vm278_vm0, %v621_v53, 0.0 }
 0x11b   : > { %624 = vpow2.f32 %v385_v54  ;;  %392 = vadd.xlane.f32.xlu0 %v391_v55 }
 0x11c   : > { %v378_v56 = vpop.xlane.xlu0 %377 }
 0x11d   : > { %v382_v57 = vsub.f32 %v366_v41, %v378_v56 }
 0x11f   : > { %v623_v58 = vpop.eup %622  ;;  %v389_v59 = vmul.f32 1.442695, %v382_v57 }
 0x120   : > { %v397_v60 = vsel %vm278_vm0, %v623_v58, 0.0 }
 0x121   : > { %v625_v61 = vpop.eup %624  ;;  %626 = vpow2.f32 %v389_v59  ;;  %398 = vadd.xlane.f32.xlu2 %v397_v60 }
 0x122   : > { %v394_v62 = vsel %vm278_vm0, %v625_v61, 0.0 }
 0x123   : > { %395 = vadd.xlane.f32.xlu1 %v394_v62 }
 0x127   : > { %v627_v63 = vpop.eup %626 }
 0x128   : > { %v400_v0 = vsel %vm278_vm0, %v627_v63, 0.0 }
 0x129   : > { %401 = vadd.xlane.f32.xlu2 %v400_v0 }
 0x18e   : > { %v393_v13 = vpop.xlane.xlu0 %392 }
 0x18f   : > { %628 = vrcp.f32 %v393_v13 }
 0x194   : > { %v399_v14 = vpop.xlane.xlu2 %398 }
 0x195   : > { %v629_v15 = vpop.eup %628  ;;  %630 = vrcp.f32 %v399_v14 }
 0x196   : > { %v407_v16 = vmul.f32 %v629_v15, %v621_v53  ;;  %v396_v17 = vpop.xlane.xlu1 %395 }
 0x197   : > { %632 = vrcp.f32 %v396_v17 }
 0x198   : > { %v411_v18 = vpack.c.bf16 %v407_v16, %v407_v16 }
 0x19a   : > { %601 = vmatmul.msk.bf16.vlgmr.msrb.gmra.mxu0 %vm278_vm0, %v411_v18 }
 0x19b   : > { %v631_v19 = vpop.eup %630 }
 0x19c   : > { %v409_v20 = vmul.f32 %v631_v19, %v623_v58  ;;  %v402_v21 = vpop.xlane.xlu2 %401 }
 0x19d   : > { %v633_v22 = vpop.eup %632  ;;  %634 = vrcp.f32 %v402_v21 }
 0x19e   : > { %v408_v23 = vmul.f32 %v633_v22, %v625_v61  ;;  %v413_v24 = vpack.c.bf16 %v409_v20, %v409_v20 }
 0x1a0   : > { %v412_v25 = vpack.c.bf16 %v408_v23, %v408_v23  ;;  %603 = vmatmul.msk.bf16.vlgmr.msrb.gmra.mxu2 %vm278_vm0, %v413_v24 }
 0x1a2   : > { %602 = vmatmul.msk.bf16.vlgmr.msrb.gmra.mxu1 %vm278_vm0, %v412_v25 }
 0x1a3   : > { %v635_v26 = vpop.eup %634 }
 0x1a4   : > { %v410_v27 = vmul.f32 %v635_v26, %v627_v63 }
 0x1a6   : > { %v414_v28 = vpack.c.bf16 %v410_v27, %v410_v27 }
 0x1a8   : > { %604 = vmatmul.msk.bf16.vlgmr.msrb.gmra.mxu3 %vm278_vm0, %v414_v28 }
 0x217   : > { %v431_v29 = vpop.f32.mrf.mxu0 }
 0x218   : > { %492 = vst.msk [vmem:[%s251_s6] sm:$0xff] %vm278_vm0, %v431_v29 }
 0x21f   : > { %v433_v30 = vpop.f32.mrf.mxu0  ;;  %v450_v31 = vpop.f32.mrf.mxu1 }
 0x220   : > { %493 = vst.msk [vmem:[%s251_s6 + $0x8] sm:$0xff] %vm278_vm0, %v450_v31 }
 0x223   : > { %v469_v32 = vpop.f32.mrf.mxu2 }
 0x224   : > { %494 = vst.msk [vmem:[%s251_s6 + $0x10] sm:$0xff] %vm278_vm0, %v469_v32 }
 0x227   : > { %v452_v33 = vpop.f32.mrf.mxu1 }
 0x22b   : > { %v471_v34 = vpop.f32.mrf.mxu2  ;;  %v488_v35 = vpop.f32.mrf.mxu3 }
 0x22c   : > { %495 = vst.msk [vmem:[%s251_s6 + $0x18] sm:$0xff] %vm278_vm0, %v488_v35 }
 0x233   : > { %v490_v36 = vpop.f32.mrf.mxu3 }
 0x234 PF: > { %s14_s15 = sadd.s32 1, %s642_s15  }
 0x235   : > { %p11_p4 = scmp.ge.s32.totalorder %s14_s15, 4  }
 0x237   :  { %13 = sbr.rel (!%p11_p4) target bundleno = 1 (0x1), region = 75 }

// kernel: seq2seq_forward.32
= control target key start
LH: loop header
LB: loop body
LE: loop exit
PB: predicated region body
PF: predicated region fallthrough
CT: control target
= control target key end

     0   :  { %s319_s12 = smov 0   ;;  %s345_s0 = inlined_call_operand.vmem [shape: f32[16,32], index: 0, kind: input, shape index: {}]   ;;  %s346_s1 = inlined_call_operand.vmem [shape: bf16[32,64], index: 1, kind: input, shape index: {}]   ;;  %s347_s2 = inlined_call_operand.vmem [shape: f32[1,64], index: 2, kind: input, shape index: {}]   ;;  %s348_s3 = inlined_call_operand.vmem [shape: f32[16,64], index: 3, kind: output, shape index: {}]  }
   0x1 LB: > { %s262_s13 = sadd.s32 4294967295, %s297_s12   ;;  %p266_p0 = scmp.ge.s32.totalorder %s297_s12, 1  ;;  %s297_s12 = sphi %s319_s12, %s13_s12  }
   0x2   : > { %p136_p1 = scmp.lt.s32.totalorder %s297_s12, 3 }
   0x4   : > { %p137_p2 = pnand %p266_p0, %p136_p1 }
   0x5   : > { %p158_p3 = scmp.lt.s32.totalorder (!%p137_p2), %s262_s13, 1 }
   0x6   : > { %140 = sbr.rel (%p137_p2) target bundleno = 153 (0x99), region = 32 }
   0xb   : > { %v281_v0 = vld [vmem:[%s346_s1 + $0x8] sm:$0xff]  ;;  %v280_v1 = vld [vmem:[%s346_s1] sm:$0xff]  ;;  %s350_s13 = smov (!%p158_p3, %s262_s13), 1  ;;  %vm189_vm0 = vcmask 261120   ;;  %vm207_vm1 = vcmask 523264  }
   0xc   : > { %199 = vmatpush.bf16.msra.mxu0 %v281_v0  ;;  %s267_s18 = sshll.u32 %s350_s13, 3  ;;  %v290_v4 = vld [vmem:[%s347_s2] ss:$0 sm:$0xff] }
   0xd   : > { %s161_s21 = scalar_lea.vmem %s345_s0, %s267_s18  ;;  %s165_s26 = scalar_lea.vmem %s348_s3, %s267_s18 }
   0xe   : > { %v167_v2 = vld [vmem:[%s161_s21] sm:$0xff] }
   0xf   : > { %v168_v3 = vpack.c.bf16 %v167_v2, %v167_v2 }
  0x10   : > { %200 = vmatpush.bf16.msra.mxu0 %v280_v1 }
  0x13   : > { %277 = vmatmul.msk.bf16.vlgmr.msra.gmra.mxu0 %vm189_vm0, %v168_v3 }
  0x90   : > { %v202_v5 = vpop.f32.mrf.mxu0 }
  0x91   : > { %v203_v6 = vadd.f32 %v290_v4, %v202_v5 }
  0x93   : > { %v206_v7 = vmax.f32 %v203_v6, 0.0 }
  0x95   : > { %208 = vst.msk [vmem:[%s165_s26] sm:$0xff] %vm207_vm1, %v206_v7 }
  0x98   : > { %v204_v8 = vpop.f32.mrf.mxu0 }
  0x99 PF: > { %s13_s12 = sadd.s32 1, %s297_s12  }
  0x9a   : > { %p10_p4 = scmp.ge.s32.totalorder %s13_s12, 4  }
  0x9c   :  { %12 = sbr.rel (!%p10_p4) target bundleno = 1 (0x1), region = 62 }

// kernel: seq2seq_forward.33
= control target key start
LH: loop header
LB: loop body
LE: loop exit
PB: predicated region body
PF: predicated region fallthrough
CT: control target
= control target key end

     0   :  { %s519_s21 = smov 0   ;;  %s568_s0 = inlined_call_operand.vmem [shape: f32[16,64], index: 0, kind: input, shape index: {}]   ;;  %s569_s1 = inlined_call_operand.vmem [shape: bf16[64,32], index: 1, kind: input, shape index: {}]   ;;  %s570_s2 = inlined_call_operand.vmem [shape: f32[1,32], index: 2, kind: input, shape index: {}]   ;;  %s571_s3 = inlined_call_operand.vmem [shape: f32[16,32], index: 3, kind: input, shape index: {}]   ;;  %s572_s4 = inlined_call_operand.vmem [shape: f32[1,32], index: 4, kind: input, shape index: {}]   ;;  %s573_s5 = inlined_call_operand.vmem [shape: f32[1,32], index: 5, kind: input, shape index: {}]   ;;  %s574_s6 = inlined_call_operand.vmem [shape: f32[16,32], index: 6, kind: output, shape index: {}]  }
   0x1 LB: > { %s428_s22 = sadd.s32 4294967295, %s481_s21   ;;  %p432_p0 = scmp.ge.s32.totalorder %s481_s21, 1  ;;  %s481_s21 = sphi %s519_s21, %s16_s21  }
   0x2   : > { %p220_p1 = scmp.lt.s32.totalorder %s481_s21, 3 }
   0x4   : > { %p221_p2 = pnand %p432_p0, %p220_p1 }
   0x5   : > { %p252_p3 = scmp.lt.s32.totalorder (!%p221_p2), %s428_s22, 1 }
   0x6   : > { %224 = sbr.rel (%p221_p2) target bundleno = 426 (0x1aa), region = 44 }
   0xb   : > { %v458_v0 = vld [vmem:[%s569_s1 + $0x18] sm:$0xff]  ;;  %v457_v1 = vld [vmem:[%s569_s1 + $0x10] sm:$0xff]  ;;  %s576_s22 = smov (!%p252_p3, %s428_s22), 1  ;;  %v456_v2 = vld [vmem:[%s569_s1 + $0x8] sm:$0xff]  ;;  %vm303_vm0 = vcmask 523264   ;;  %vm322_vm1 = vcmask 261120  }
   0xc   : > { %311 = vmatpush.bf16.msra.mxu0 %v458_v0  ;;  %s533_s27 = sshll.u32 %s576_s22, 3  ;;  %v455_v3 = vld [vmem:[%s569_s1] sm:$0xff]  ;;  %v483_v13 = vmov 32.0  }
   0xd   : > { %s255_s8 = scalar_lea.vmem %s568_s0, %s533_s27  ;;  %v468_v6 = vld [vmem:[%s570_s2] ss:$0 sm:$0xff]  ;;  %s259_s15 = scalar_lea.vmem %s571_s3, %s533_s27  ;;  %471 = vrcp.f32 %v483_v13 }
   0xe   : > { %v265_v4 = vld [vmem:[%s255_s8] sm:$0xff]  ;;  %s263_s23 = scalar_lea.vmem %s574_s6, %s533_s27 }
   0xf   : > { %v266_v5 = vpack.c.bf16 %v265_v4, %v265_v4  ;;  %v320_v8 = vld [vmem:[%s259_s15] sm:$0xff] }
  0x10   : > { %312 = vmatpush.bf16.msra.mxu0 %v457_v1  ;;  %v469_v34 = vld [vmem:[%s572_s4] ss:$0 sm:$0xff] }
  0x11   : > { %v470_v36 = vld [vmem:[%s573_s5] ss:$0 sm:$0xff] }
  0x13   : > { %v472_v14 = vpop.eup %471 }
  0x14   : > { %313 = vmatpush.bf16.msra.mxu0 %v456_v2  ;;  %v327_v15 = vmul.f32 32.0, %v472_v14  ;;  %vm331_vm2 = vweird.f32 %v472_v14 }
  0x16   : > { %v328_v16 = vsub.f32 1.0, %v327_v15 }
  0x18   : > { %314 = vmatpush.bf16.msra.mxu0 %v455_v3  ;;  %v329_v17 = vmul.f32 %v472_v14, %v328_v16 }
  0x1a   : > { %v330_v18 = vadd.f32 %v472_v14, %v329_v17 }
  0x1b   : > { %452 = vmatmul.msk.bf16.vlgmr.msra.gmra.mxu0 %vm303_vm0, %v266_v5 }
  0x1c   : > { %v332_v19 = vsel %vm331_vm2, %v472_v14, %v330_v18 }
  0x98   : > { %v316_v7 = vpop.f32.mrf.mxu0 }
  0x99   : > { %v317_v9 = vadd.f32 %v468_v6, %v316_v7 }
  0x9b   : > { %v321_v10 = vadd.f32 %v320_v8, %v317_v9 }
  0x9d   : > { %v323_v11 = vsel %vm322_vm1, %v321_v10, 0.0 }
  0x9e   : > { %324 = vadd.xlane.f32.xlu0 %v323_v11 }
  0xa0   : > { %v318_v12 = vpop.f32.mrf.mxu0 }
 0x111   : > { %v325_v20 = vpop.xlane.xlu0 %324 }
 0x112   : > { %v333_v21 = vmul.f32 %v332_v19, %v325_v20 }
 0x114   : > { %v334_v22 = vsub.f32 %v321_v10, %v333_v21 }
 0x116   : > { %v335_v23 = vmul.f32 %v334_v22, %v334_v22 }
 0x118   : > { %v336_v24 = vsel %vm322_vm1, %v335_v23, 0.0 }
 0x119   : > { %337 = vadd.xlane.f32.xlu0 %v336_v24 }
 0x18c   : > { %v338_v25 = vpop.xlane.xlu0 %337 }
 0x18d   : > { %v339_v26 = vmul.f32 %v338_v25, %v332_v19 }
 0x18f   : > { %v340_v27 = vadd.f32 1e-05, %v339_v26 }
 0x191   : > { %473 = vrsqrt.f32 %v340_v27  ;;  %vm347_vm4 = vweird.f32 %v340_v27 }
 0x197   : > { %v474_v28 = vpop.eup %473 }
 0x198   : > { %v342_v29 = vmul.f32 %v474_v28, %v340_v27  ;;  %vm348_vm3 = vweird.f32 %v474_v28 }
 0x199   : > { %vm349_vm5 = vmor %vm347_vm4, %vm348_vm3 }
 0x19a   : > { %v343_v30 = vmul.f32 %v474_v28, %v342_v29 }
 0x19c   : > { %v344_v31 = vmul.f32 0.5, %v343_v30 }
 0x19e   : > { %v345_v32 = vsub.f32 1.5, %v344_v31 }
 0x1a0   : > { %v346_v33 = vmul.f32 %v474_v28, %v345_v32 }
 0x1a2   : > { %v350_v35 = vsel %vm349_vm5, %v474_v28, %v346_v33 }
 0x1a3   : > { %v351_v37 = vmul.f32 %v350_v35, %v334_v22 }
 0x1a5   : > { %v356_v38 = vmul.f32 %v469_v34, %v351_v37 }
 0x1a7   : > { %v361_v39 = vadd.f32 %v470_v36, %v356_v38 }
 0x1a9   : > { %362 = vst.msk [vmem:[%s263_s23] sm:$0xff] %vm322_vm1, %v361_v39 }
 0x1aa PF: > { %s16_s21 = sadd.s32 1, %s481_s21  }
 0x1ab   : > { %p13_p4 = scmp.ge.s32.totalorder %s16_s21, 4  }
 0x1ad   :  { %15 = sbr.rel (!%p13_p4) target bundleno = 1 (0x1), region = 77 }

// kernel: seq2seq_forward.43
= control target key start
LH: loop header
LB: loop body
LE: loop exit
PB: predicated region body
PF: predicated region fallthrough
CT: control target
= control target key end

     0   :  { %s318_s12 = smov 0   ;;  %s338_s0 = inlined_call_operand.vmem [shape: f32[16,32], index: 0, kind: input, shape index: {}]   ;;  %s339_s1 = inlined_call_operand.vmem [shape: bf16[32,64], index: 1, kind: input, shape index: {}]   ;;  %s340_s2 = inlined_call_operand.vmem [shape: f32[1,64], index: 2, kind: input, shape index: {}]   ;;  %s341_s3 = inlined_call_operand.vmem [shape: f32[16,64], index: 3, kind: output, shape index: {}]  }
   0x1 LB: > { %s261_s13 = sadd.s32 4294967295, %s296_s12   ;;  %p265_p0 = scmp.ge.s32.totalorder %s296_s12, 1  ;;  %s296_s12 = sphi %s318_s12, %s13_s12  }
   0x2   : > { %p136_p1 = scmp.lt.s32.totalorder %s296_s12, 3 }
   0x4   : > { %p137_p2 = pnand %p265_p0, %p136_p1 }
   0x5   : > { %p158_p3 = scmp.lt.s32.totalorder (!%p137_p2), %s261_s13, 1 }
   0x6   : > { %140 = sbr.rel (%p137_p2) target bundleno = 153 (0x99), region = 32 }
   0xb   : > { %v280_v0 = vld [vmem:[%s339_s1 + $0x8] sm:$0xff]  ;;  %v279_v1 = vld [vmem:[%s339_s1] sm:$0xff]  ;;  %s343_s13 = smov (!%p158_p3, %s261_s13), 1  ;;  %vm189_vm0 = vcmask 261120   ;;  %vm206_vm1 = vcmask 523264  }
   0xc   : > { %199 = vmatpush.bf16.msra.mxu0 %v280_v0  ;;  %s266_s18 = sshll.u32 %s343_s13, 3  ;;  %v289_v4 = vld [vmem:[%s340_s2] ss:$0 sm:$0xff] }
   0xd   : > { %s161_s21 = scalar_lea.vmem %s338_s0, %s266_s18  ;;  %s165_s26 = scalar_lea.vmem %s341_s3, %s266_s18 }
   0xe   : > { %v167_v2 = vld [vmem:[%s161_s21] sm:$0xff] }
   0xf   : > { %v168_v3 = vpack.c.bf16 %v167_v2, %v167_v2 }
  0x10   : > { %200 = vmatpush.bf16.msra.mxu0 %v279_v1 }
  0x13   : > { %276 = vmatmul.msk.bf16.vlgmr.msra.gmra.mxu0 %vm189_vm0, %v168_v3 }
  0x90   : > { %v202_v5 = vpop.f32.mrf.mxu0 }
  0x91   : > { %v203_v6 = vadd.f32 %v289_v4, %v202_v5 }
  0x93   : > { %207 = vst.msk [vmem:[%s165_s26] sm:$0xff] %vm206_vm1, %v203_v6 }
  0x98   : > { %v204_v7 = vpop.f32.mrf.mxu0 }
  0x99 PF: > { %s13_s12 = sadd.s32 1, %s296_s12  }
  0x9a   : > { %p10_p4 = scmp.ge.s32.totalorder %s13_s12, 4  }
  0x9c   :  { %12 = sbr.rel (!%p10_p4) target bundleno = 1 (0x1), region = 62 }

// kernel: seq2seq_forward.57
= control target key start
LH: loop header
LB: loop body
LE: loop exit
PB: predicated region body
PF: predicated region fallthrough
CT: control target
= control target key end

     0   :  { %8 = vsyncpa [#allocation3], 0  ;;  %s522_s0 = inlined_call_operand.vmem [shape: f32[16,32], index: 0, kind: input, shape index: {}]   ;;  %s523_s1 = inlined_call_operand.vmem [shape: bf16[32,50], index: 1, kind: input, shape index: {}]   ;;  %s524_s2 = inlined_call_operand.vmem [shape: f32[1,50], index: 2, kind: input, shape index: {}]   ;;  %s525_s3 = inlined_call_operand.hbm [shape: f32[16,50], index: 3, kind: output, shape index: {}]  }
   0x1   :  { %10 = vsyncpa [#allocation3 + $0x1], 0  ;;  %s428_s12 = smov 0   ;;  %s430_s13 = smov 0  }
   0x2   :  { %s432_s14 = smov 0   ;;  %s434_s15 = smov 0  }
   0x3 LB: > { %s449_s16 = sadd.s32 4294967295, %s406_s15   ;;  %s283_s17 = sadd.s32 4294967294, %s406_s15   ;;  %s406_s15 = sphi %s434_s15, %s531_s15   ;;  %s402_s14 = sphi %s432_s14, %s530_s14   ;;  %s398_s13 = sphi %s430_s13, %s529_s13   ;;  %s394_s12 = sphi %s428_s12, %s528_s12  }
   0x4   : > { %s453_s18 = sadd.s32 1, %s406_s15   ;;  %s91_s19 = sadd.s32 1, %s402_s14 }
   0x5   : > { %s88_s20 = ssub.s32 %s406_s15, %s453_s18  ;;  %p101_p0 = scmp.ne.s32.totalorder %s402_s14, %s398_s13 }
   0x6   : > { %p89_p1 = scmp.eq.s32.totalorder %s88_s20, 0  ;;  %p102_p2 = scmp.eq.s32.totalorder %s449_s16, 1 }
   0x7   : > { %p107_p3 = scmp.ne.s32.totalorder %s398_s13, %s394_s12  ;;  %p108_p4 = scmp.eq.s32.totalorder %s283_s17, 1 }
   0x8   : > { %s464_s21 = scalar_select %p89_p1, %s402_s14, %s91_s19  }
   0x9   : > { %p466_p5 = por %p102_p2, %p101_p0  ;;  %p470_p6 = por %p108_p4, %p107_p3 }
   0xa   : > { %p286_p7 = scmp.ge.s32.totalorder %s406_s15, 1  ;;  %p139_p8 = scmp.lt.s32.totalorder %s406_s15, 3 }
   0xc   : > { %p140_p9 = pnand %p286_p7, %p139_p8 }
   0xd   : > { %p162_p10 = scmp.lt.s32.totalorder (!%p140_p9), %s449_s16, 1  ;;  %s159_s6 = sand.u32 (!%p140_p9), 1, %s398_s13  }
   0xe   : > { %143 = sbr.rel (%p140_p9) target bundleno = 161 (0xa1), region = 32  ;;  %s299_s7 = sshll.u32 (!%p140_p9), %s449_s16, 3 }
   0xf   : > { %s287_s8 = sshll.u32 (!%p140_p9), %s159_s6, 3  ;;  %s219_s11 = scalar_lea.hbm (!%p140_p9), %s525_s3, %s299_s7 }
  0x10   : > { %s161_s20 = scalar_lea.vmem (!%p140_p9), [#allocation2], %s287_s8  ;;  %s223_s25 = sshll.u32 (!%p140_p9), %s219_s11, 4  ;;  %s224_s25 = int_to_ptr.hbm [resolvable:$true] %s223_s25 }
  0x11   : > { %s221_s24 = sshll.u32 (!%p140_p9), %s161_s20, 4  ;;  %s358_s26 = sshra.s32 (!%p140_p9), %s224_s25, 4  ;;  %s222_s24 = int_to_ptr.vmem [resolvable:$true] %s221_s24  ;;  %s359_s26 = int_to_ptr.hbm [resolvable:$true] %s358_s26 }
  0x12   : > { %s360_s27 = scalar_lea.hbm (!%p140_p9), %s359_s26, 8  ;;  %s364_s30 = scalar_lea.hbm (!%p140_p9), %s525_s3, 16 }
  0x13   : > { %v303_v0 = vld [vmem:[%s523_s1 + $0x8] sm:$0xff]  ;;  %v302_v1 = vld [vmem:[%s523_s1] sm:$0xff]  ;;  %s163_s28 = scalar_select %p162_p10, %s449_s16, 1  ;;  %vm189_vm0 = vcmask 261120   ;;  %vm206_vm1 = vcmask 408576  }
  0x14   : > { %199 = vmatpush.bf16.msra.mxu0 %v303_v0  ;;  %v343_v4 = vld [vmem:[%s524_s2] ss:$0 sm:$0xff]  ;;  %s209_s16 = scalar_lea.sflag [#allocation3], %s159_s6  ;;  %p361_p11 = scmp.ne.s32.totalorder %s359_s26, %s360_s27 }
  0x15   : > { %s288_s29 = sshll.u32 %s163_s28, 3  ;;  %p365_p0 = scmp.lt.s32.totalorder %s359_s26, %s525_s3 }
  0x16   : > { %s165_s5 = scalar_lea.vmem %s522_s0, %s288_s29  ;;  %p362_p12 = pnand %p361_p11, %p466_p5 }
  0x17   : > { %v167_v2 = vld [vmem:[%s165_s5] sm:$0xff]  ;;  %p366_p1 = scmp.lt.s32.totalorder %s364_s30, %s360_s27 }
  0x18   : > { %200 = vmatpush.bf16.msra.mxu0 %v302_v1  ;;  %v168_v3 = vpack.c.bf16 %v167_v2, %v167_v2  ;;  %p363_p13 = pneg %p362_p12 }
  0x19   : > { %p367_p2 = por %p366_p1, %p365_p0 }
  0x1b   : > { %297 = vmatmul.msk.bf16.vlgmr.msra.gmra.mxu0 %vm189_vm0, %v168_v3  ;;  %p368_p3 = pnand %p367_p2, %p363_p13 }
  0x98   : > { %v202_v5 = vpop.f32.mrf.mxu0 }
  0x99   : > { %v203_v6 = vadd.f32 %v343_v4, %v202_v5 }
  0x9b   : > { %207 = vst.msk [vmem:[%s161_s20] sm:$0xff] %vm206_vm1, %v203_v6 }
  0x9c   : > { %371 = shalt.err (!%p368_p3)
}
  0x9d   : > { %304 = dma.vmem_to_hbm [thread:$0]  (%p466_p5), %s222_s24, 128, %s224_s25, %s209_s16  }
  0xa0   : > { %v204_v7 = vpop.f32.mrf.mxu0 }
  0xa1 PF: > { %p310_p4 = scmp.ge.s32.totalorder %s406_s15, 2  ;;  %s235_s6 = sand.u32 1, %s394_s12  }
  0xa2   : > { %s236_s7 = scalar_lea.sflag [#allocation3], %s235_s6 }
  0xa3   : > { %p307_p7 = pnand %p310_p4, %p470_p6 }
  0xa5   : > { %p308_p8 = pneg %p307_p7 }
  0xa7   : > { %389 = dma.done.wait (%p308_p8), %s236_s7, 128  }
  0xa8   : > { %391 = vsyncadd (%p308_p8), %s236_s7, 4294967168  ;;  %p13_p9 = scmp.ge.s32.totalorder %s453_s18, 4   ;;  %s528_s12 = smov %s398_s13 }
  0xa9   : > { %s529_s13 = smov %s402_s14  ;;  %s530_s14 = smov %s464_s21 }
  0xaa   : > { %s531_s15 = smov %s453_s18  ;;  %15 = sbr.rel (!%p13_p9) target bundleno = 3 (0x3), region = 67 }
  0xaf   :  { %242 = vsyncpa [#allocation3], 1 }
  0xb0   :  { %244 = vsyncpa [#allocation3 + $0x1], 1 }

// kernel: seq2seq_forward.53
= control target key start
LH: loop header
LB: loop body
LE: loop exit
PB: predicated region body
PF: predicated region fallthrough
CT: control target
= control target key end

     0   :  { %11 = vsyncpa [#allocation3], 0  ;;  %s1019_s0 = inlined_call_operand.vmem [shape: f32[2,4,8,8], index: 0, kind: input, shape index: {}]   ;;  %s1020_s1 = inlined_call_operand.vmem [shape: f32[2,4,8,8], index: 1, kind: input, shape index: {}]   ;;  %s1021_s2 = inlined_call_operand.vmem [shape: f32[2,4,8,8], index: 2, kind: input, shape index: {}]   ;;  %s1022_s3 = inlined_call_operand.vmem [shape: s32[2,1,8], index: 3, kind: input, shape index: {}]   ;;  %s1023_s4 = inlined_call_operand.vmem [shape: f32[2,4,8,8], index: 4, kind: output, shape index: {0}]   ;;  %s1024_s5 = inlined_call_operand.hbm [shape: f32[2,4,8,8], index: 5, kind: output, shape index: {1}]  }
   0x1   :  { %13 = vsyncpa [#allocation3 + $0x1], 0  ;;  %s868_s18 = smov 0   ;;  %s870_s19 = smov 0  }
   0x2   :  { %s872_s20 = smov 0   ;;  %s874_s21 = smov 0  }
   0x3 LB: > { %s889_s22 = sadd.s32 4294967295, %s833_s21   ;;  %s682_s23 = sadd.s32 4294967294, %s833_s21   ;;  %s833_s21 = sphi %s874_s21, %s1032_s21   ;;  %s829_s20 = sphi %s872_s20, %s1031_s20   ;;  %s825_s19 = sphi %s870_s19, %s1030_s19   ;;  %s821_s18 = sphi %s868_s18, %s1029_s18  }
   0x4   : > { %s893_s24 = sadd.s32 1, %s833_s21   ;;  %s156_s25 = sadd.s32 1, %s829_s20 }
   0x5   : > { %s153_s26 = ssub.s32 %s833_s21, %s893_s24  ;;  %p166_p0 = scmp.ne.s32.totalorder %s829_s20, %s825_s19 }
   0x6   : > { %p154_p1 = scmp.eq.s32.totalorder %s153_s26, 0  ;;  %p167_p2 = scmp.eq.s32.totalorder %s889_s22, 1 }
   0x7   : > { %p172_p3 = scmp.ne.s32.totalorder %s825_s19, %s821_s18  ;;  %p173_p4 = scmp.eq.s32.totalorder %s682_s23, 1 }
   0x8   : > { %s904_s27 = scalar_select %p154_p1, %s829_s20, %s156_s25  }
   0x9   : > { %p906_p5 = por %p167_p2, %p166_p0  ;;  %p910_p6 = por %p173_p4, %p172_p3 }
   0xa   : > { %p685_p7 = scmp.ge.s32.totalorder %s833_s21, 1  ;;  %p221_p8 = scmp.lt.s32.totalorder %s833_s21, 3 }
   0xc   : > { %p222_p9 = pnand %p685_p7, %p221_p8 }
   0xd   : > { %p267_p10 = scmp.lt.s32.totalorder (!%p222_p9), %s889_s22, 1  ;;  %s264_s25 = sand.u32 (!%p222_p9), 1, %s825_s19  }
   0xe   : > { %225 = sbr.rel (%p222_p9) target bundleno = 573 (0x23d), region = 36  ;;  %s686_s26 = sshll.u32 (!%p222_p9), %s264_s25, 5 }
   0xf   : > { %s712_s7 = sshll.u32 (!%p222_p9), %s889_s22, 5  ;;  %s544_s13 = scalar_lea.sflag (!%p222_p9), [#allocation3], %s264_s25 }
  0x10   : > { %s558_s10 = scalar_lea.hbm (!%p222_p9), %s1024_s5, %s712_s7 }
  0x13   : > { %s918_s30 = scalar_select %p267_p10, %s889_s22, 1  ;;  %vm316_vm0 = vcmask 64512   ;;  %v835_v21 = vmov 0   ;;  %vm456_vm3 = vcmask 1043456  }
  0x14   : > { %s791_s22 = scalar_lea.hbm %s1024_s5, 64 }
  0x15   : > { %s921_s6 = sshll.u32 %s918_s30, 5  ;;  %s284_s15 = scalar_lea.vmem %s1022_s3, %s918_s30 }
  0x16   : > { %s276_s9 = scalar_lea.vmem %s1020_s1, %s921_s6  ;;  %s271_s12 = scalar_lea.vmem %s1019_s0, %s921_s6  ;;  %v315_v20 = vld [vmem:[%s284_s15] sm:$0x1] }
  0x17   : > { %v299_v0 = vld [vmem:[%s276_s9] sm:$0xff]  ;;  %v301_v1 = vld [vmem:[%s276_s9 + $0x10] sm:$0xff]  ;;  %v302_v2 = vld [vmem:[%s276_s9 + $0x18] sm:$0xff]  ;;  %vm397_vm1 = vcmp.ne.s32.totalorder %v315_v20, 0  ;;  %s281_s23 = scalar_lea.vmem %s1021_s2, %s921_s6  ;;  %s266_s30 = scalar_lea.vmem [#allocation2], %s686_s26 }
  0x18   : > { %v303_v3 = vpack.c.bf16 %v299_v0, %v299_v0  ;;  %v305_v4 = vpack.c.bf16 %v301_v1, %v301_v1  ;;  %v306_v5 = vpack.c.bf16 %v302_v2, %v302_v2  ;;  %v300_v6 = vld [vmem:[%s276_s9 + $0x8] sm:$0xff]  ;;  %v291_v11 = vld [vmem:[%s271_s12] sm:$0xff]  ;;  %v293_v12 = vld [vmem:[%s271_s12 + $0x10] sm:$0xff]  ;;  %v398_v22 = vsel %vm397_vm1, 1, %v835_v21  ;;  %s559_s11 = sshll.u32 %s266_s30, 4  ;;  %s560_s11 = int_to_ptr.vmem [resolvable:$true] %s559_s11 }
  0x19   : > { %v304_v10 = vpack.c.bf16 %v300_v6, %v300_v6  ;;  %v294_v13 = vld [vmem:[%s271_s12 + $0x18] sm:$0xff]  ;;  %v292_v15 = vld [vmem:[%s271_s12 + $0x8] sm:$0xff]  ;;  %v295_v16 = vpack.c.bf16 %v291_v11, %v291_v11  ;;  %v297_v17 = vpack.c.bf16 %v293_v12, %v293_v12  ;;  %v399_v23 = vperm.slane %v398_v22, 0  ;;  %v307_v1 = vld [vmem:[%s281_s23] sm:$0xff]  ;;  %s561_s12 = sshll.u32 %s558_s10, 4  ;;  %s562_s12 = int_to_ptr.hbm [resolvable:$true] %s561_s12 }
  0x1a   : > { %v321_v7 = vsel %vm316_vm0, %v303_v3, 0  ;;  %v359_v8 = vsel %vm316_vm0, %v305_v4, 0  ;;  %v378_v9 = vsel %vm316_vm0, %v306_v5, 0  ;;  %v298_v18 = vpack.c.bf16 %v294_v13, %v294_v13  ;;  %v309_v4 = vld [vmem:[%s281_s23 + $0x10] sm:$0xff]  ;;  %v308_v6 = vld [vmem:[%s281_s23 + $0x8] sm:$0xff]  ;;  %s785_s14 = sshra.s32 %s562_s12, 4  ;;  %s786_s14 = int_to_ptr.hbm [resolvable:$true] %s785_s14 }
  0x1b   : > { %330 = vmatpush.bf16.xpose.msra.mxu0 %v321_v7  ;;  %368 = vmatpush.bf16.xpose.msra.mxu2 %v359_v8  ;;  %v340_v14 = vsel %vm316_vm0, %v304_v10, 0  ;;  %v296_v19 = vpack.c.bf16 %v292_v15, %v292_v15  ;;  %vm943_vm2 = vcmp.eq.s32.totalorder %v399_v23, 1  ;;  %v311_v2 = vpack.c.bf16 %v307_v1, %v307_v1  ;;  %v310_v10 = vld [vmem:[%s281_s23 + $0x18] sm:$0xff]  ;;  %s787_s15 = scalar_lea.hbm %s786_s14, 32  ;;  %p792_p0 = scmp.lt.s32.totalorder %s786_s14, %s1024_s5 }
  0x1c   : > { %387 = vmatpush.bf16.xpose.msra.mxu3 %v378_v9  ;;  %349 = vmatpush.bf16.xpose.msra.mxu1 %v340_v14  ;;  %v313_v5 = vpack.c.bf16 %v309_v4, %v309_v4  ;;  %v312_v8 = vpack.c.bf16 %v308_v6, %v308_v6  ;;  %v314_v11 = vpack.c.bf16 %v310_v10, %v310_v10  ;;  %p788_p11 = scmp.ne.s32.totalorder %s786_s14, %s787_s15  ;;  %p793_p1 = scmp.lt.s32.totalorder %s791_s22, %s787_s15 }
  0x1d   : > { %v458_v3 = vsel %vm456_vm3, %v311_v2, 0 }
  0x1e   : > { %v496_v7 = vsel %vm456_vm3, %v313_v5, 0  ;;  %v477_v9 = vsel %vm456_vm3, %v312_v8, 0  ;;  %v515_v12 = vsel %vm456_vm3, %v314_v11, 0  ;;  %p789_p12 = pnand %p788_p11, %p906_p5  ;;  %p794_p2 = por %p793_p1, %p792_p0 }
  0x20   : > { %p790_p13 = pneg %p789_p12 }
  0x22   : > { %695 = vmatmul.msk.bf16.vlgmr.msra.gmra.mxu0 %vm316_vm0, %v295_v16  ;;  %697 = vmatmul.msk.bf16.vlgmr.msra.gmra.mxu2 %vm316_vm0, %v297_v17  ;;  %p795_p3 = pnand %p794_p2, %p790_p13 }
  0x23   : > { %698 = vmatmul.msk.bf16.vlgmr.msra.gmra.mxu3 %vm316_vm0, %v298_v18  ;;  %696 = vmatmul.msk.bf16.vlgmr.msra.gmra.mxu1 %vm316_vm0, %v296_v19 }
  0x24   : > { %467 = vmatpush.bf16.msrb.mxu0 %v458_v3  ;;  %505 = vmatpush.bf16.msrb.mxu2 %v496_v7 }
  0x25   : > { %486 = vmatpush.bf16.msrb.mxu1 %v477_v9  ;;  %524 = vmatpush.bf16.msrb.mxu3 %v515_v12 }
  0x9f   : > { %v332_v24 = vpop.f32.mrf.mxu0 }
  0xa0   : > { %v393_v26 = vmul.f32 0.35355338, %v332_v24  ;;  %v351_v27 = vpop.f32.mrf.mxu1 }
  0xa1   : > { %v394_v29 = vmul.f32 0.35355338, %v351_v27 }
  0xa2   : > { %v401_v28 = vsel %vm943_vm2, %v393_v26, -1e+10 }
  0xa3   : > { %v405_v30 = vsel %vm316_vm0, %v401_v28, -inf  ;;  %v402_v34 = vsel %vm943_vm2, %v394_v29, -1e+10 }
  0xa4   : > { %406 = vmax.xlane.f32.xlu1 %v405_v30  ;;  %v408_v39 = vsel %vm316_vm0, %v402_v34, -inf }
  0xa5   : > { %v370_v31 = vpop.f32.mrf.mxu2 }
  0xa6   : > { %v395_v32 = vmul.f32 0.35355338, %v370_v31  ;;  %v389_v33 = vpop.f32.mrf.mxu3 }
  0xa7   : > { %v334_v35 = vpop.f32.mrf.mxu0  ;;  %v396_v36 = vmul.f32 0.35355338, %v389_v33 }
  0xa8   : > { %v403_v37 = vsel %vm943_vm2, %v395_v32, -1e+10  ;;  %v353_v40 = vpop.f32.mrf.mxu1 }
  0xa9   : > { %v411_v38 = vsel %vm316_vm0, %v403_v37, -inf  ;;  %v404_v41 = vsel %vm943_vm2, %v396_v36, -1e+10 }
  0xaa   : > { %412 = vmax.xlane.f32.xlu0 %v411_v38  ;;  %v414_v44 = vsel %vm316_vm0, %v404_v41, -inf }
  0xac   : > { %409 = vmax.xlane.f32.xlu1 %v408_v39 }
  0xad   : > { %v372_v42 = vpop.f32.mrf.mxu2 }
  0xae   : > { %v391_v43 = vpop.f32.mrf.mxu3 }
  0xb2   : > { %415 = vmax.xlane.f32.xlu0 %v414_v44 }
 0x117   : > { %v407_v45 = vpop.xlane.xlu1 %406 }
 0x118   : > { %v417_v46 = vsub.f32 %v401_v28, %v407_v45 }
 0x11a   : > { %v421_v47 = vmul.f32 1.442695, %v417_v46 }
 0x11c   : > { %755 = vpow2.f32 %v421_v47 }
 0x11d   : > { %v413_v48 = vpop.xlane.xlu0 %412 }
 0x11e   : > { %v419_v49 = vsub.f32 %v403_v37, %v413_v48 }
 0x11f   : > { %v410_v50 = vpop.xlane.xlu1 %409 }
 0x120   : > { %v425_v51 = vmul.f32 1.442695, %v419_v49  ;;  %v418_v52 = vsub.f32 %v402_v34, %v410_v50 }
 0x122   : > { %v756_v53 = vpop.eup %755  ;;  %757 = vpow2.f32 %v425_v51  ;;  %v423_v54 = vmul.f32 1.442695, %v418_v52 }
 0x123   : > { %v429_v55 = vsel %vm316_vm0, %v756_v53, 0.0 }
 0x124   : > { %759 = vpow2.f32 %v423_v54  ;;  %430 = vadd.xlane.f32.xlu0 %v429_v55 }
 0x125   : > { %v416_v56 = vpop.xlane.xlu0 %415 }
 0x126   : > { %v420_v57 = vsub.f32 %v404_v41, %v416_v56 }
 0x128   : > { %v758_v58 = vpop.eup %757  ;;  %v427_v59 = vmul.f32 1.442695, %v420_v57 }
 0x129   : > { %v435_v60 = vsel %vm316_vm0, %v758_v58, 0.0 }
 0x12a   : > { %v760_v61 = vpop.eup %759  ;;  %761 = vpow2.f32 %v427_v59  ;;  %436 = vadd.xlane.f32.xlu2 %v435_v60 }
 0x12b   : > { %v432_v62 = vsel %vm316_vm0, %v760_v61, 0.0 }
 0x12c   : > { %433 = vadd.xlane.f32.xlu1 %v432_v62 }
 0x130   : > { %v762_v63 = vpop.eup %761 }
 0x131   : > { %v438_v0 = vsel %vm316_vm0, %v762_v63, 0.0 }
 0x132   : > { %439 = vadd.xlane.f32.xlu2 %v438_v0 }
 0x197   : > { %v431_v13 = vpop.xlane.xlu0 %430 }
 0x198   : > { %763 = vrcp.f32 %v431_v13 }
 0x19d   : > { %v437_v14 = vpop.xlane.xlu2 %436 }
 0x19e   : > { %v764_v15 = vpop.eup %763  ;;  %765 = vrcp.f32 %v437_v14 }
 0x19f   : > { %v445_v16 = vmul.f32 %v764_v15, %v756_v53  ;;  %v434_v17 = vpop.xlane.xlu1 %433 }
 0x1a0   : > { %767 = vrcp.f32 %v434_v17 }
 0x1a1   : > { %534 = vst.msk [vmem:[%s266_s30] sm:$0xff] %vm316_vm0, %v445_v16  ;;  %v449_v18 = vpack.c.bf16 %v445_v16, %v445_v16 }
 0x1a3   : > { %699 = vmatmul.msk.bf16.vlgmr.msrb.gmra.mxu0 %vm316_vm0, %v449_v18 }
 0x1a4   : > { %v766_v19 = vpop.eup %765 }
 0x1a5   : > { %v447_v20 = vmul.f32 %v766_v19, %v758_v58  ;;  %v440_v21 = vpop.xlane.xlu2 %439 }
 0x1a6   : > { %v768_v22 = vpop.eup %767  ;;  %769 = vrcp.f32 %v440_v21 }
 0x1a7   : > { %536 = vst.msk [vmem:[%s266_s30 + $0x10] sm:$0xff] %vm316_vm0, %v447_v20  ;;  %v446_v23 = vmul.f32 %v768_v22, %v760_v61  ;;  %v451_v24 = vpack.c.bf16 %v447_v20, %v447_v20 }
 0x1a9   : > { %535 = vst.msk [vmem:[%s266_s30 + $0x8] sm:$0xff] %vm316_vm0, %v446_v23  ;;  %701 = vmatmul.msk.bf16.vlgmr.msrb.gmra.mxu2 %vm316_vm0, %v451_v24  ;;  %v450_v25 = vpack.c.bf16 %v446_v23, %v446_v23 }
 0x1ab   : > { %700 = vmatmul.msk.bf16.vlgmr.msrb.gmra.mxu1 %vm316_vm0, %v450_v25 }
 0x1ac   : > { %v770_v26 = vpop.eup %769 }
 0x1ad   : > { %v448_v27 = vmul.f32 %v770_v26, %v762_v63 }
 0x1af   : > { %537 = vst.msk [vmem:[%s266_s30 + $0x18] sm:$0xff] %vm316_vm0, %v448_v27  ;;  %v452_v28 = vpack.c.bf16 %v448_v27, %v448_v27 }
 0x1b1   : > { %702 = vmatmul.msk.bf16.vlgmr.msrb.gmra.mxu3 %vm316_vm0, %v452_v28 }
 0x1b2   : > { %798 = shalt.err (!%p795_p3)
}
 0x1b3   : > { %s836_s25 = smov 128   ;;  %s837_s30 = smov 8  }
 0x1b4   : > { %713 = dma.vmem_to_hbm [thread:$0]  (%p906_p5), %s560_s11, 512, %s562_s12, %s544_s13, %s836_s25, %s836_s25, %s837_s30  }
 0x1b5   : > { %s289_s9 = scalar_lea.vmem %s1023_s4, %s921_s6 }
 0x220   : > { %v469_v29 = vpop.f32.mrf.mxu0 }
 0x221   : > { %530 = vst.msk [vmem:[%s289_s9] sm:$0xff] %vm316_vm0, %v469_v29 }
 0x228   : > { %v471_v30 = vpop.f32.mrf.mxu0  ;;  %v488_v31 = vpop.f32.mrf.mxu1 }
 0x229   : > { %531 = vst.msk [vmem:[%s289_s9 + $0x8] sm:$0xff] %vm316_vm0, %v488_v31 }
 0x22c   : > { %v507_v32 = vpop.f32.mrf.mxu2 }
 0x22d   : > { %532 = vst.msk [vmem:[%s289_s9 + $0x10] sm:$0xff] %vm316_vm0, %v507_v32 }
 0x230   : > { %v490_v33 = vpop.f32.mrf.mxu1 }
 0x234   : > { %v509_v34 = vpop.f32.mrf.mxu2  ;;  %v526_v35 = vpop.f32.mrf.mxu3 }
 0x235   : > { %533 = vst.msk [vmem:[%s289_s9 + $0x18] sm:$0xff] %vm316_vm0, %v526_v35 }
 0x23c   : > { %v528_v36 = vpop.f32.mrf.mxu3 }
 0x23d PF: > { %p719_p4 = scmp.ge.s32.totalorder %s833_s21, 2  ;;  %s584_s28 = sand.u32 1, %s821_s18  }
 0x23e   : > { %s585_s6 = scalar_lea.sflag [#allocation3], %s584_s28 }
 0x23f   : > { %p716_p5 = pnand %p719_p4, %p910_p6 }
 0x241   : > { %p717_p7 = pneg %p716_p5 }
 0x243   : > { %816 = dma.done.wait (%p717_p7), %s585_s6, 512  }
 0x244   : > { %818 = vsyncadd (%p717_p7), %s585_s6, 4294966784  ;;  %p16_p8 = scmp.ge.s32.totalorder %s893_s24, 4   ;;  %s1029_s18 = smov %s825_s19 }
 0x245   : > { %s1030_s19 = smov %s829_s20  ;;  %s1031_s20 = smov %s904_s27 }
 0x246   : > { %s1032_s21 = smov %s893_s24  ;;  %18 = sbr.rel (!%p16_p8) target bundleno = 3 (0x3), region = 92 }
 0x24b   :  { %591 = vsyncpa [#allocation3], 1 }
 0x24c   :  { %593 = vsyncpa [#allocation3 + $0x1], 1 }

</bundles_post_ra>
